<compile_context>
chip_gen: v7x
topology: tpu7x:2x2x1
jax: 0.10.0
libtpu: 0.0.40
codegen_flags: <defaults>
</compile_context>

<pallas_src>
import jax
import jax.numpy as jnp
import numpy as np
from jax.experimental import pallas as pl
from jax.experimental.pallas import tpu as pltpu

INPUT_SIZE = 1
HIDDEN = 32
NUM_LAYERS = 2
OUTPUT_SIZE = 1


def lstm_kernel(x_ref, wslab_ref, consts_ref, out_ref):
    """Fused 2-layer LSTM recurrence + fc head, fully unrolled over time.

    x_ref      : (T, B, 1)   f32  time-major input
    wslab_ref  : (4H, 4H)    bf16 stacked [whh0 ; wih1^T ; whh1^T ; fcw padded]
                             (gate-permuted to (i, f, o, g))
    consts_ref : (4, 4H)     f32  rows = [wih0_row ; b0 ; b1 ; fcb padded]
    out_ref    : (B, OUT)    f32

    Gate layout after the wrapper permutation is (i, f, o, g), so sigmoid is
    applied once over the first 3H lanes and tanh once over the last H lanes.
    """
    T = x_ref.shape[0]
    H = HIDDEN
    OUT = OUTPUT_SIZE

    # ---- constant rows (f32, VPU operands) ----------------------------------
    wih0 = consts_ref[0:1, :]            # (1, 4H) layer-0 input weights
    b0 = consts_ref[1:2, :]              # (1, 4H) layer-0 combined bias
    b1 = consts_ref[2:3, :]              # (1, 4H) layer-1 combined bias
    fcb = consts_ref[3:4, :]             # (1, 4H) fc bias (only [:, :OUT] real)

    # ---- bf16 MXU weights (static, aligned slices of the packed slab) -------
    whh0 = wslab_ref[0 * H:1 * H, :]     # (H, 4H)
    wih1 = wslab_ref[1 * H:2 * H, :]     # (H, 4H)
    whh1 = wslab_ref[2 * H:3 * H, :]     # (H, 4H)
    fcw = wslab_ref[3 * H:4 * H, :]      # (H, 4H) (only [:, :OUT] nonzero)

    # ---- hoisted layer-0 input projection (+bias) for all timesteps ---------
    # (T, B, 1) * (1, 4H) + (1, 4H) -> (T, B, 4H); valid because input_size==1.
    xg0_all = x_ref[...] * wih0 + b0

    def gate_split(gates):
        # gate columns: [i | f | o] -> one sigmoid over 3H lanes, [g] -> tanh
        sfo = jax.nn.sigmoid(gates[:, :3 * H])
        g = jnp.tanh(gates[:, 3 * H:])
        return sfo[:, :H], sfo[:, H:2 * H], sfo[:, 2 * H:], g

    def cell(gates, c_prev):
        i, f, o, g = gate_split(gates)
        c_new = f * c_prev + i * g
        return o * jnp.tanh(c_new), c_new

    def cell0(gates):
        # zero previous cell state: c = i*g, h = o*tanh(c)
        i, _, o, g = gate_split(gates)
        c_new = i * g
        return o * jnp.tanh(c_new), c_new

    bf16 = jnp.bfloat16

    # ---- peeled t = 0 (all states are zero -> recurrent dots skipped) -------
    h0, c0 = cell0(xg0_all[0])
    gates1 = jnp.dot(h0.astype(bf16), wih1,
                     preferred_element_type=jnp.float32) + b1
    h1, c1 = cell0(gates1)

    # ---- fused, fully unrolled recurrence (T is small & static) -------------
    # TODO(synk): if T grows past ~40, switch to lax.fori_loop(unroll=4) with
    # xg0_all in a VMEM scratch to avoid vreg spills.
    for t in range(1, T):
        # layer 0: hoisted input projection + one recurrent bf16 dot
        gates0 = xg0_all[t] + jnp.dot(h0.astype(bf16), whh0,
                                      preferred_element_type=jnp.float32)
        h0, c0 = cell(gates0, c0)

        # layer 1: two independent bf16 dots (no per-step lane concat)
        gates1 = (jnp.dot(h0.astype(bf16), wih1,
                          preferred_element_type=jnp.float32)
                  + jnp.dot(h1.astype(bf16), whh1,
                            preferred_element_type=jnp.float32)
                  + b1)
        h1, c1 = cell(gates1, c1)

    # ---- fc head on the register-resident final hidden of the top layer -----
    out_full = jnp.dot(h1.astype(bf16), fcw,
                       preferred_element_type=jnp.float32) + fcb   # (B, 4H)
    out_ref[...] = out_full[:, :OUT]


def lstm_model_forward(x, params):
    """x: (B, T, input_size) float32, batch_first like the PyTorch module."""
    B, T, in_sz = x.shape
    assert in_sz == INPUT_SIZE == 1, (
        "hoisted layer-0 input projection requires input_size == 1")
    H = HIDDEN
    OUT = OUTPUT_SIZE

    x_tm = jnp.transpose(x, (1, 0, 2)).astype(jnp.float32)        # (T, B, 1)

    # Gate permutation: PyTorch order (i, f, g, o) -> kernel order (i, f, o, g)
    perm = np.r_[0:H, H:2 * H, 3 * H:4 * H, 2 * H:3 * H]

    wih0 = params["wih0"][perm].T.astype(jnp.float32)              # (1, 4H)
    whh0 = params["whh0"][perm].T                                  # (H, 4H)
    b0 = (params["bih0"] + params["bhh0"])[perm].reshape(1, 4 * H)
    wih1_t = params["wih1"][perm].T                                # (H, 4H)
    whh1_t = params["whh1"][perm].T                                # (H, 4H)
    b1 = (params["bih1"] + params["bhh1"])[perm].reshape(1, 4 * H)
    fcw = params["fc_w"].T                                         # (H, OUT)
    fcb = params["fc_b"].reshape(1, OUT)

    # bf16 MXU weight slab: [whh0 ; wih1^T ; whh1^T ; fcw padded to 4H lanes]
    fcw_pad = jnp.zeros((H, 4 * H), jnp.float32).at[:, :OUT].set(fcw)
    wslab = jnp.concatenate([whh0, wih1_t, whh1_t, fcw_pad],
                            axis=0).astype(jnp.bfloat16)           # (4H, 4H)

    # f32 constants slab: rows [wih0_row ; b0 ; b1 ; fcb padded]
    fcb_pad = jnp.zeros((1, 4 * H), jnp.float32).at[:, :OUT].set(fcb)
    consts = jnp.concatenate([wih0, b0, b1, fcb_pad],
                             axis=0).astype(jnp.float32)           # (4, 4H)

    vmem = pl.BlockSpec(memory_space=pltpu.MemorySpace.VMEM)
    return pl.pallas_call(
        lstm_kernel,
        out_shape=jax.ShapeDtypeStruct((B, OUT), jnp.float32),
        in_specs=[vmem, vmem, vmem],
        out_specs=vmem,
    )(x_tm, wslab, consts)


# ---------------- pure-JAX reference (matches PyTorch nn.LSTM semantics) -----
def lstm_ref(x, params):
    B = x.shape[0]
    H = HIDDEN

    def run_layer(seq, wih, whh, b):
        def cell(carry, x_t):
            h, c = carry
            gates = x_t @ wih.T + h @ whh.T + b
            i, f, g, o = jnp.split(gates, 4, axis=-1)
            c = jax.nn.sigmoid(f) * c + jax.nn.sigmoid(i) * jnp.tanh(g)
            h = jax.nn.sigmoid(o) * jnp.tanh(c)
            return (h, c), h

        h0 = jnp.zeros((B, H), jnp.float32)
        c0 = jnp.zeros((B, H), jnp.float32)
        _, hs = jax.lax.scan(cell, (h0, c0), jnp.transpose(seq, (1, 0, 2)))
        return jnp.transpose(hs, (1, 0, 2))

    b0 = params["bih0"] + params["bhh0"]
    b1 = params["bih1"] + params["bhh1"]
    s1 = run_layer(x, params["wih0"], params["whh0"], b0)
    s2 = run_layer(s1, params["wih1"], params["whh1"], b1)
    return s2[:, -1, :] @ params["fc_w"].T + params["fc_b"]


def init_params(key):
    """Deterministic init mimicking PyTorch's U(-1/sqrt(H), 1/sqrt(H))."""
    H = HIDDEN
    k = 1.0 / np.sqrt(H)
    names_shapes = [
        ("wih0", (4 * H, INPUT_SIZE)), ("whh0", (4 * H, H)),
        ("bih0", (4 * H,)), ("bhh0", (4 * H,)),
        ("wih1", (4 * H, H)), ("whh1", (4 * H, H)),
        ("bih1", (4 * H,)), ("bhh1", (4 * H,)),
        ("fc_w", (OUTPUT_SIZE, H)), ("fc_b", (OUTPUT_SIZE,)),
    ]
    params = {}
    keys = jax.random.split(key, len(names_shapes))
    for (name, shape), kk in zip(names_shapes, keys):
        params[name] = jax.random.uniform(kk, shape, jnp.float32, -k, k)
    return params


if __name__ == "__main__":
    key = jax.random.PRNGKey(0)
    pkey, xkey = jax.random.split(key)
    params = init_params(pkey)

    B, T = 4, 8
    x = jax.random.normal(xkey, (B, T, INPUT_SIZE), jnp.float32)

    out = lstm_model_forward(x, params)
    out = jax.block_until_ready(out)

    ref = jax.block_until_ready(lstm_ref(x, params))
    assert out.shape == (B, OUTPUT_SIZE)
    # bf16 MXU operands -> small compounded deviation vs the f32 reference.
    assert np.allclose(np.asarray(out), np.asarray(ref), atol=2e-2, rtol=2e-2)

    print("KERNEL_OK")
</pallas_src>

<mosaic_0001>
module attributes {stable_mosaic.version = 11 : i64} {
  func.func @lstm_kernel(%arg0: memref<8x4x1xf32, #tpu.memory_space<vmem>>, %arg1: memref<128x128xbf16, #tpu.memory_space<vmem>>, %arg2: memref<4x128xf32, #tpu.memory_space<vmem>>, %arg3: memref<4x1xf32, #tpu.memory_space<vmem>>) attributes {dimension_semantics = [], scalar_prefetch = 0 : i64, scratch_operands = 0 : i64, tpu.core_type = #tpu.core_type<tc>} {
    %c0 = arith.constant 0 : index
    %c0_0 = arith.constant 0 : index
    %0 = vector.load %arg2[%c0, %c0_0] : memref<4x128xf32, #tpu.memory_space<vmem>>, vector<1x128xf32>
    %c1 = arith.constant 1 : index
    %c0_1 = arith.constant 0 : index
    %1 = vector.load %arg2[%c1, %c0_1] : memref<4x128xf32, #tpu.memory_space<vmem>>, vector<1x128xf32>
    %c2 = arith.constant 2 : index
    %c0_2 = arith.constant 0 : index
    %2 = vector.load %arg2[%c2, %c0_2] : memref<4x128xf32, #tpu.memory_space<vmem>>, vector<1x128xf32>
    %c3 = arith.constant 3 : index
    %c0_3 = arith.constant 0 : index
    %3 = vector.load %arg2[%c3, %c0_3] : memref<4x128xf32, #tpu.memory_space<vmem>>, vector<1x128xf32>
    %c0_4 = arith.constant 0 : index
    %c0_5 = arith.constant 0 : index
    %4 = vector.load %arg1[%c0_4, %c0_5] : memref<128x128xbf16, #tpu.memory_space<vmem>>, vector<32x128xbf16>
    %c32 = arith.constant 32 : index
    %c0_6 = arith.constant 0 : index
    %5 = vector.load %arg1[%c32, %c0_6] : memref<128x128xbf16, #tpu.memory_space<vmem>>, vector<32x128xbf16>
    %c64 = arith.constant 64 : index
    %c0_7 = arith.constant 0 : index
    %6 = vector.load %arg1[%c64, %c0_7] : memref<128x128xbf16, #tpu.memory_space<vmem>>, vector<32x128xbf16>
    %c96 = arith.constant 96 : index
    %c0_8 = arith.constant 0 : index
    %7 = vector.load %arg1[%c96, %c0_8] : memref<128x128xbf16, #tpu.memory_space<vmem>>, vector<32x128xbf16>
    %c0_9 = arith.constant 0 : index
    %c0_10 = arith.constant 0 : index
    %c0_11 = arith.constant 0 : index
    %8 = vector.load %arg0[%c0_9, %c0_10, %c0_11] : memref<8x4x1xf32, #tpu.memory_space<vmem>>, vector<8x4x1xf32>
    %9 = vector.shape_cast %0 : vector<1x128xf32> to vector<1x1x128xf32>
    %10 = vector.broadcast %8 : vector<8x4x1xf32> to vector<8x4x128xf32>
    %11 = vector.broadcast %9 : vector<1x1x128xf32> to vector<8x4x128xf32>
    %12 = arith.mulf %10, %11 : vector<8x4x128xf32>
    %13 = vector.shape_cast %1 : vector<1x128xf32> to vector<1x1x128xf32>
    %14 = vector.broadcast %13 : vector<1x1x128xf32> to vector<8x4x128xf32>
    %15 = arith.addf %12, %14 : vector<8x4x128xf32>
    %16 = vector.extract_strided_slice %15 {offsets = [0, 0, 0], sizes = [1, 4, 128], strides = [1, 1, 1]} : vector<8x4x128xf32> to vector<1x4x128xf32>
    %17 = vector.shape_cast %16 : vector<1x4x128xf32> to vector<4x128xf32>
    %18 = vector.extract_strided_slice %17 {offsets = [0, 0], sizes = [4, 96], strides = [1, 1]} : vector<4x128xf32> to vector<4x96xf32>
    %19 = arith.negf %18 : vector<4x96xf32>
    %20 = math.exp %19 : vector<4x96xf32>
    %cst = arith.constant 1.000000e+00 : f32
    %21 = vector.broadcast %cst : f32 to vector<4x96xf32>
    %22 = arith.addf %21, %20 : vector<4x96xf32>
    %23 = arith.divf %21, %22 : vector<4x96xf32>
    %24 = vector.extract_strided_slice %17 {offsets = [0, 96], sizes = [4, 32], strides = [1, 1]} : vector<4x128xf32> to vector<4x32xf32>
    %25 = math.tanh %24 : vector<4x32xf32>
    %26 = vector.extract_strided_slice %23 {offsets = [0, 0], sizes = [4, 32], strides = [1, 1]} : vector<4x96xf32> to vector<4x32xf32>
    %27 = vector.extract_strided_slice %23 {offsets = [0, 64], sizes = [4, 32], strides = [1, 1]} : vector<4x96xf32> to vector<4x32xf32>
    %28 = arith.mulf %26, %25 : vector<4x32xf32>
    %29 = math.tanh %28 : vector<4x32xf32>
    %30 = arith.mulf %27, %29 : vector<4x32xf32>
    %31 = arith.truncf %30 : vector<4x32xf32> to vector<4x32xbf16>
    %cst_12 = arith.constant dense<0.000000e+00> : vector<4x128xf32>
    %32 = tpu.matmul %31, %5, %cst_12 {dimension_numbers = #tpu.dot_dimension_numbers<[1], [0], [0], [1], [0, 0, 1, 1], [], []>} : vector<4x32xbf16>, vector<32x128xbf16>, vector<4x128xf32> -> vector<4x128xf32>
    %33 = vector.broadcast %2 : vector<1x128xf32> to vector<4x128xf32>
    %34 = arith.addf %32, %33 : vector<4x128xf32>
    %35 = vector.extract_strided_slice %34 {offsets = [0, 0], sizes = [4, 96], strides = [1, 1]} : vector<4x128xf32> to vector<4x96xf32>
    %36 = arith.negf %35 : vector<4x96xf32>
    %37 = math.exp %36 : vector<4x96xf32>
    %cst_13 = arith.constant 1.000000e+00 : f32
    %38 = vector.broadcast %cst_13 : f32 to vector<4x96xf32>
    %39 = arith.addf %38, %37 : vector<4x96xf32>
    %40 = arith.divf %38, %39 : vector<4x96xf32>
    %41 = vector.extract_strided_slice %34 {offsets = [0, 96], sizes = [4, 32], strides = [1, 1]} : vector<4x128xf32> to vector<4x32xf32>
    %42 = math.tanh %41 : vector<4x32xf32>
    %43 = vector.extract_strided_slice %40 {offsets = [0, 0], sizes = [4, 32], strides = [1, 1]} : vector<4x96xf32> to vector<4x32xf32>
    %44 = vector.extract_strided_slice %40 {offsets = [0, 64], sizes = [4, 32], strides = [1, 1]} : vector<4x96xf32> to vector<4x32xf32>
    %45 = arith.mulf %43, %42 : vector<4x32xf32>
    %46 = math.tanh %45 : vector<4x32xf32>
    %47 = arith.mulf %44, %46 : vector<4x32xf32>
    %48 = vector.extract_strided_slice %15 {offsets = [1, 0, 0], sizes = [1, 4, 128], strides = [1, 1, 1]} : vector<8x4x128xf32> to vector<1x4x128xf32>
    %49 = vector.shape_cast %48 : vector<1x4x128xf32> to vector<4x128xf32>
    %50 = arith.truncf %30 : vector<4x32xf32> to vector<4x32xbf16>
    %cst_14 = arith.constant dense<0.000000e+00> : vector<4x128xf32>
    %51 = tpu.matmul %50, %4, %cst_14 {dimension_numbers = #tpu.dot_dimension_numbers<[1], [0], [0], [1], [0, 0, 1, 1], [], []>} : vector<4x32xbf16>, vector<32x128xbf16>, vector<4x128xf32> -> vector<4x128xf32>
    %52 = arith.addf %49, %51 : vector<4x128xf32>
    %53 = vector.extract_strided_slice %52 {offsets = [0, 0], sizes = [4, 96], strides = [1, 1]} : vector<4x128xf32> to vector<4x96xf32>
    %54 = arith.negf %53 : vector<4x96xf32>
    %55 = math.exp %54 : vector<4x96xf32>
    %cst_15 = arith.constant 1.000000e+00 : f32
    %56 = vector.broadcast %cst_15 : f32 to vector<4x96xf32>
    %57 = arith.addf %56, %55 : vector<4x96xf32>
    %58 = arith.divf %56, %57 : vector<4x96xf32>
    %59 = vector.extract_strided_slice %52 {offsets = [0, 96], sizes = [4, 32], strides = [1, 1]} : vector<4x128xf32> to vector<4x32xf32>
    %60 = math.tanh %59 : vector<4x32xf32>
    %61 = vector.extract_strided_slice %58 {offsets = [0, 0], sizes = [4, 32], strides = [1, 1]} : vector<4x96xf32> to vector<4x32xf32>
    %62 = vector.extract_strided_slice %58 {offsets = [0, 32], sizes = [4, 32], strides = [1, 1]} : vector<4x96xf32> to vector<4x32xf32>
    %63 = vector.extract_strided_slice %58 {offsets = [0, 64], sizes = [4, 32], strides = [1, 1]} : vector<4x96xf32> to vector<4x32xf32>
    %64 = arith.mulf %62, %28 : vector<4x32xf32>
    %65 = arith.mulf %61, %60 : vector<4x32xf32>
    %66 = arith.addf %64, %65 : vector<4x32xf32>
    %67 = math.tanh %66 : vector<4x32xf32>
    %68 = arith.mulf %63, %67 : vector<4x32xf32>
    %69 = arith.truncf %68 : vector<4x32xf32> to vector<4x32xbf16>
    %cst_16 = arith.constant dense<0.000000e+00> : vector<4x128xf32>
    %70 = tpu.matmul %69, %5, %cst_16 {dimension_numbers = #tpu.dot_dimension_numbers<[1], [0], [0], [1], [0, 0, 1, 1], [], []>} : vector<4x32xbf16>, vector<32x128xbf16>, vector<4x128xf32> -> vector<4x128xf32>
    %71 = arith.truncf %47 : vector<4x32xf32> to vector<4x32xbf16>
    %cst_17 = arith.constant dense<0.000000e+00> : vector<4x128xf32>
    %72 = tpu.matmul %71, %6, %cst_17 {dimension_numbers = #tpu.dot_dimension_numbers<[1], [0], [0], [1], [0, 0, 1, 1], [], []>} : vector<4x32xbf16>, vector<32x128xbf16>, vector<4x128xf32> -> vector<4x128xf32>
    %73 = arith.addf %70, %72 : vector<4x128xf32>
    %74 = vector.broadcast %2 : vector<1x128xf32> to vector<4x128xf32>
    %75 = arith.addf %73, %74 : vector<4x128xf32>
    %76 = vector.extract_strided_slice %75 {offsets = [0, 0], sizes = [4, 96], strides = [1, 1]} : vector<4x128xf32> to vector<4x96xf32>
    %77 = arith.negf %76 : vector<4x96xf32>
    %78 = math.exp %77 : vector<4x96xf32>
    %cst_18 = arith.constant 1.000000e+00 : f32
    %79 = vector.broadcast %cst_18 : f32 to vector<4x96xf32>
    %80 = arith.addf %79, %78 : vector<4x96xf32>
    %81 = arith.divf %79, %80 : vector<4x96xf32>
    %82 = vector.extract_strided_slice %75 {offsets = [0, 96], sizes = [4, 32], strides = [1, 1]} : vector<4x128xf32> to vector<4x32xf32>
    %83 = math.tanh %82 : vector<4x32xf32>
    %84 = vector.extract_strided_slice %81 {offsets = [0, 0], sizes = [4, 32], strides = [1, 1]} : vector<4x96xf32> to vector<4x32xf32>
    %85 = vector.extract_strided_slice %81 {offsets = [0, 32], sizes = [4, 32], strides = [1, 1]} : vector<4x96xf32> to vector<4x32xf32>
    %86 = vector.extract_strided_slice %81 {offsets = [0, 64], sizes = [4, 32], strides = [1, 1]} : vector<4x96xf32> to vector<4x32xf32>
    %87 = arith.mulf %85, %45 : vector<4x32xf32>
    %88 = arith.mulf %84, %83 : vector<4x32xf32>
    %89 = arith.addf %87, %88 : vector<4x32xf32>
    %90 = math.tanh %89 : vector<4x32xf32>
    %91 = arith.mulf %86, %90 : vector<4x32xf32>
    %92 = vector.extract_strided_slice %15 {offsets = [2, 0, 0], sizes = [1, 4, 128], strides = [1, 1, 1]} : vector<8x4x128xf32> to vector<1x4x128xf32>
    %93 = vector.shape_cast %92 : vector<1x4x128xf32> to vector<4x128xf32>
    %94 = arith.truncf %68 : vector<4x32xf32> to vector<4x32xbf16>
    %cst_19 = arith.constant dense<0.000000e+00> : vector<4x128xf32>
    %95 = tpu.matmul %94, %4, %cst_19 {dimension_numbers = #tpu.dot_dimension_numbers<[1], [0], [0], [1], [0, 0, 1, 1], [], []>} : vector<4x32xbf16>, vector<32x128xbf16>, vector<4x128xf32> -> vector<4x128xf32>
    %96 = arith.addf %93, %95 : vector<4x128xf32>
    %97 = vector.extract_strided_slice %96 {offsets = [0, 0], sizes = [4, 96], strides = [1, 1]} : vector<4x128xf32> to vector<4x96xf32>
    %98 = arith.negf %97 : vector<4x96xf32>
    %99 = math.exp %98 : vector<4x96xf32>
    %cst_20 = arith.constant 1.000000e+00 : f32
    %100 = vector.broadcast %cst_20 : f32 to vector<4x96xf32>
    %101 = arith.addf %100, %99 : vector<4x96xf32>
    %102 = arith.divf %100, %101 : vector<4x96xf32>
    %103 = vector.extract_strided_slice %96 {offsets = [0, 96], sizes = [4, 32], strides = [1, 1]} : vector<4x128xf32> to vector<4x32xf32>
    %104 = math.tanh %103 : vector<4x32xf32>
    %105 = vector.extract_strided_slice %102 {offsets = [0, 0], sizes = [4, 32], strides = [1, 1]} : vector<4x96xf32> to vector<4x32xf32>
    %106 = vector.extract_strided_slice %102 {offsets = [0, 32], sizes = [4, 32], strides = [1, 1]} : vector<4x96xf32> to vector<4x32xf32>
    %107 = vector.extract_strided_slice %102 {offsets = [0, 64], sizes = [4, 32], strides = [1, 1]} : vector<4x96xf32> to vector<4x32xf32>
    %108 = arith.mulf %106, %66 : vector<4x32xf32>
    %109 = arith.mulf %105, %104 : vector<4x32xf32>
    %110 = arith.addf %108, %109 : vector<4x32xf32>
    %111 = math.tanh %110 : vector<4x32xf32>
    %112 = arith.mulf %107, %111 : vector<4x32xf32>
    %113 = arith.truncf %112 : vector<4x32xf32> to vector<4x32xbf16>
    %cst_21 = arith.constant dense<0.000000e+00> : vector<4x128xf32>
    %114 = tpu.matmul %113, %5, %cst_21 {dimension_numbers = #tpu.dot_dimension_numbers<[1], [0], [0], [1], [0, 0, 1, 1], [], []>} : vector<4x32xbf16>, vector<32x128xbf16>, vector<4x128xf32> -> vector<4x128xf32>
    %115 = arith.truncf %91 : vector<4x32xf32> to vector<4x32xbf16>
    %cst_22 = arith.constant dense<0.000000e+00> : vector<4x128xf32>
    %116 = tpu.matmul %115, %6, %cst_22 {dimension_numbers = #tpu.dot_dimension_numbers<[1], [0], [0], [1], [0, 0, 1, 1], [], []>} : vector<4x32xbf16>, vector<32x128xbf16>, vector<4x128xf32> -> vector<4x128xf32>
    %117 = arith.addf %114, %116 : vector<4x128xf32>
    %118 = vector.broadcast %2 : vector<1x128xf32> to vector<4x128xf32>
    %119 = arith.addf %117, %118 : vector<4x128xf32>
    %120 = vector.extract_strided_slice %119 {offsets = [0, 0], sizes = [4, 96], strides = [1, 1]} : vector<4x128xf32> to vector<4x96xf32>
    %121 = arith.negf %120 : vector<4x96xf32>
    %122 = math.exp %121 : vector<4x96xf32>
    %cst_23 = arith.constant 1.000000e+00 : f32
    %123 = vector.broadcast %cst_23 : f32 to vector<4x96xf32>
    %124 = arith.addf %123, %122 : vector<4x96xf32>
    %125 = arith.divf %123, %124 : vector<4x96xf32>
    %126 = vector.extract_strided_slice %119 {offsets = [0, 96], sizes = [4, 32], strides = [1, 1]} : vector<4x128xf32> to vector<4x32xf32>
    %127 = math.tanh %126 : vector<4x32xf32>
    %128 = vector.extract_strided_slice %125 {offsets = [0, 0], sizes = [4, 32], strides = [1, 1]} : vector<4x96xf32> to vector<4x32xf32>
    %129 = vector.extract_strided_slice %125 {offsets = [0, 32], sizes = [4, 32], strides = [1, 1]} : vector<4x96xf32> to vector<4x32xf32>
    %130 = vector.extract_strided_slice %125 {offsets = [0, 64], sizes = [4, 32], strides = [1, 1]} : vector<4x96xf32> to vector<4x32xf32>
    %131 = arith.mulf %129, %89 : vector<4x32xf32>
    %132 = arith.mulf %128, %127 : vector<4x32xf32>
    %133 = arith.addf %131, %132 : vector<4x32xf32>
    %134 = math.tanh %133 : vector<4x32xf32>
    %135 = arith.mulf %130, %134 : vector<4x32xf32>
    %136 = vector.extract_strided_slice %15 {offsets = [3, 0, 0], sizes = [1, 4, 128], strides = [1, 1, 1]} : vector<8x4x128xf32> to vector<1x4x128xf32>
    %137 = vector.shape_cast %136 : vector<1x4x128xf32> to vector<4x128xf32>
    %138 = arith.truncf %112 : vector<4x32xf32> to vector<4x32xbf16>
    %cst_24 = arith.constant dense<0.000000e+00> : vector<4x128xf32>
    %139 = tpu.matmul %138, %4, %cst_24 {dimension_numbers = #tpu.dot_dimension_numbers<[1], [0], [0], [1], [0, 0, 1, 1], [], []>} : vector<4x32xbf16>, vector<32x128xbf16>, vector<4x128xf32> -> vector<4x128xf32>
    %140 = arith.addf %137, %139 : vector<4x128xf32>
    %141 = vector.extract_strided_slice %140 {offsets = [0, 0], sizes = [4, 96], strides = [1, 1]} : vector<4x128xf32> to vector<4x96xf32>
    %142 = arith.negf %141 : vector<4x96xf32>
    %143 = math.exp %142 : vector<4x96xf32>
    %cst_25 = arith.constant 1.000000e+00 : f32
    %144 = vector.broadcast %cst_25 : f32 to vector<4x96xf32>
    %145 = arith.addf %144, %143 : vector<4x96xf32>
    %146 = arith.divf %144, %145 : vector<4x96xf32>
    %147 = vector.extract_strided_slice %140 {offsets = [0, 96], sizes = [4, 32], strides = [1, 1]} : vector<4x128xf32> to vector<4x32xf32>
    %148 = math.tanh %147 : vector<4x32xf32>
    %149 = vector.extract_strided_slice %146 {offsets = [0, 0], sizes = [4, 32], strides = [1, 1]} : vector<4x96xf32> to vector<4x32xf32>
    %150 = vector.extract_strided_slice %146 {offsets = [0, 32], sizes = [4, 32], strides = [1, 1]} : vector<4x96xf32> to vector<4x32xf32>
    %151 = vector.extract_strided_slice %146 {offsets = [0, 64], sizes = [4, 32], strides = [1, 1]} : vector<4x96xf32> to vector<4x32xf32>
    %152 = arith.mulf %150, %110 : vector<4x32xf32>
    %153 = arith.mulf %149, %148 : vector<4x32xf32>
    %154 = arith.addf %152, %153 : vector<4x32xf32>
    %155 = math.tanh %154 : vector<4x32xf32>
    %156 = arith.mulf %151, %155 : vector<4x32xf32>
    %157 = arith.truncf %156 : vector<4x32xf32> to vector<4x32xbf16>
    %cst_26 = arith.constant dense<0.000000e+00> : vector<4x128xf32>
    %158 = tpu.matmul %157, %5, %cst_26 {dimension_numbers = #tpu.dot_dimension_numbers<[1], [0], [0], [1], [0, 0, 1, 1], [], []>} : vector<4x32xbf16>, vector<32x128xbf16>, vector<4x128xf32> -> vector<4x128xf32>
    %159 = arith.truncf %135 : vector<4x32xf32> to vector<4x32xbf16>
    %cst_27 = arith.constant dense<0.000000e+00> : vector<4x128xf32>
    %160 = tpu.matmul %159, %6, %cst_27 {dimension_numbers = #tpu.dot_dimension_numbers<[1], [0], [0], [1], [0, 0, 1, 1], [], []>} : vector<4x32xbf16>, vector<32x128xbf16>, vector<4x128xf32> -> vector<4x128xf32>
    %161 = arith.addf %158, %160 : vector<4x128xf32>
    %162 = vector.broadcast %2 : vector<1x128xf32> to vector<4x128xf32>
    %163 = arith.addf %161, %162 : vector<4x128xf32>
    %164 = vector.extract_strided_slice %163 {offsets = [0, 0], sizes = [4, 96], strides = [1, 1]} : vector<4x128xf32> to vector<4x96xf32>
    %165 = arith.negf %164 : vector<4x96xf32>
    %166 = math.exp %165 : vector<4x96xf32>
    %cst_28 = arith.constant 1.000000e+00 : f32
    %167 = vector.broadcast %cst_28 : f32 to vector<4x96xf32>
    %168 = arith.addf %167, %166 : vector<4x96xf32>
    %169 = arith.divf %167, %168 : vector<4x96xf32>
    %170 = vector.extract_strided_slice %163 {offsets = [0, 96], sizes = [4, 32], strides = [1, 1]} : vector<4x128xf32> to vector<4x32xf32>
    %171 = math.tanh %170 : vector<4x32xf32>
    %172 = vector.extract_strided_slice %169 {offsets = [0, 0], sizes = [4, 32], strides = [1, 1]} : vector<4x96xf32> to vector<4x32xf32>
    %173 = vector.extract_strided_slice %169 {offsets = [0, 32], sizes = [4, 32], strides = [1, 1]} : vector<4x96xf32> to vector<4x32xf32>
    %174 = vector.extract_strided_slice %169 {offsets = [0, 64], sizes = [4, 32], strides = [1, 1]} : vector<4x96xf32> to vector<4x32xf32>
    %175 = arith.mulf %173, %133 : vector<4x32xf32>
    %176 = arith.mulf %172, %171 : vector<4x32xf32>
    %177 = arith.addf %175, %176 : vector<4x32xf32>
    %178 = math.tanh %177 : vector<4x32xf32>
    %179 = arith.mulf %174, %178 : vector<4x32xf32>
    %180 = vector.extract_strided_slice %15 {offsets = [4, 0, 0], sizes = [1, 4, 128], strides = [1, 1, 1]} : vector<8x4x128xf32> to vector<1x4x128xf32>
    %181 = vector.shape_cast %180 : vector<1x4x128xf32> to vector<4x128xf32>
    %182 = arith.truncf %156 : vector<4x32xf32> to vector<4x32xbf16>
    %cst_29 = arith.constant dense<0.000000e+00> : vector<4x128xf32>
    %183 = tpu.matmul %182, %4, %cst_29 {dimension_numbers = #tpu.dot_dimension_numbers<[1], [0], [0], [1], [0, 0, 1, 1], [], []>} : vector<4x32xbf16>, vector<32x128xbf16>, vector<4x128xf32> -> vector<4x128xf32>
    %184 = arith.addf %181, %183 : vector<4x128xf32>
    %185 = vector.extract_strided_slice %184 {offsets = [0, 0], sizes = [4, 96], strides = [1, 1]} : vector<4x128xf32> to vector<4x96xf32>
    %186 = arith.negf %185 : vector<4x96xf32>
    %187 = math.exp %186 : vector<4x96xf32>
    %cst_30 = arith.constant 1.000000e+00 : f32
    %188 = vector.broadcast %cst_30 : f32 to vector<4x96xf32>
    %189 = arith.addf %188, %187 : vector<4x96xf32>
    %190 = arith.divf %188, %189 : vector<4x96xf32>
    %191 = vector.extract_strided_slice %184 {offsets = [0, 96], sizes = [4, 32], strides = [1, 1]} : vector<4x128xf32> to vector<4x32xf32>
    %192 = math.tanh %191 : vector<4x32xf32>
    %193 = vector.extract_strided_slice %190 {offsets = [0, 0], sizes = [4, 32], strides = [1, 1]} : vector<4x96xf32> to vector<4x32xf32>
    %194 = vector.extract_strided_slice %190 {offsets = [0, 32], sizes = [4, 32], strides = [1, 1]} : vector<4x96xf32> to vector<4x32xf32>
    %195 = vector.extract_strided_slice %190 {offsets = [0, 64], sizes = [4, 32], strides = [1, 1]} : vector<4x96xf32> to vector<4x32xf32>
    %196 = arith.mulf %194, %154 : vector<4x32xf32>
    %197 = arith.mulf %193, %192 : vector<4x32xf32>
    %198 = arith.addf %196, %197 : vector<4x32xf32>
    %199 = math.tanh %198 : vector<4x32xf32>
    %200 = arith.mulf %195, %199 : vector<4x32xf32>
    %201 = arith.truncf %200 : vector<4x32xf32> to vector<4x32xbf16>
    %cst_31 = arith.constant dense<0.000000e+00> : vector<4x128xf32>
    %202 = tpu.matmul %201, %5, %cst_31 {dimension_numbers = #tpu.dot_dimension_numbers<[1], [0], [0], [1], [0, 0, 1, 1], [], []>} : vector<4x32xbf16>, vector<32x128xbf16>, vector<4x128xf32> -> vector<4x128xf32>
    %203 = arith.truncf %179 : vector<4x32xf32> to vector<4x32xbf16>
    %cst_32 = arith.constant dense<0.000000e+00> : vector<4x128xf32>
    %204 = tpu.matmul %203, %6, %cst_32 {dimension_numbers = #tpu.dot_dimension_numbers<[1], [0], [0], [1], [0, 0, 1, 1], [], []>} : vector<4x32xbf16>, vector<32x128xbf16>, vector<4x128xf32> -> vector<4x128xf32>
    %205 = arith.addf %202, %204 : vector<4x128xf32>
    %206 = vector.broadcast %2 : vector<1x128xf32> to vector<4x128xf32>
    %207 = arith.addf %205, %206 : vector<4x128xf32>
    %208 = vector.extract_strided_slice %207 {offsets = [0, 0], sizes = [4, 96], strides = [1, 1]} : vector<4x128xf32> to vector<4x96xf32>
    %209 = arith.negf %208 : vector<4x96xf32>
    %210 = math.exp %209 : vector<4x96xf32>
    %cst_33 = arith.constant 1.000000e+00 : f32
    %211 = vector.broadcast %cst_33 : f32 to vector<4x96xf32>
    %212 = arith.addf %211, %210 : vector<4x96xf32>
    %213 = arith.divf %211, %212 : vector<4x96xf32>
    %214 = vector.extract_strided_slice %207 {offsets = [0, 96], sizes = [4, 32], strides = [1, 1]} : vector<4x128xf32> to vector<4x32xf32>
    %215 = math.tanh %214 : vector<4x32xf32>
    %216 = vector.extract_strided_slice %213 {offsets = [0, 0], sizes = [4, 32], strides = [1, 1]} : vector<4x96xf32> to vector<4x32xf32>
    %217 = vector.extract_strided_slice %213 {offsets = [0, 32], sizes = [4, 32], strides = [1, 1]} : vector<4x96xf32> to vector<4x32xf32>
    %218 = vector.extract_strided_slice %213 {offsets = [0, 64], sizes = [4, 32], strides = [1, 1]} : vector<4x96xf32> to vector<4x32xf32>
    %219 = arith.mulf %217, %177 : vector<4x32xf32>
    %220 = arith.mulf %216, %215 : vector<4x32xf32>
    %221 = arith.addf %219, %220 : vector<4x32xf32>
    %222 = math.tanh %221 : vector<4x32xf32>
    %223 = arith.mulf %218, %222 : vector<4x32xf32>
    %224 = vector.extract_strided_slice %15 {offsets = [5, 0, 0], sizes = [1, 4, 128], strides = [1, 1, 1]} : vector<8x4x128xf32> to vector<1x4x128xf32>
    %225 = vector.shape_cast %224 : vector<1x4x128xf32> to vector<4x128xf32>
    %226 = arith.truncf %200 : vector<4x32xf32> to vector<4x32xbf16>
    %cst_34 = arith.constant dense<0.000000e+00> : vector<4x128xf32>
    %227 = tpu.matmul %226, %4, %cst_34 {dimension_numbers = #tpu.dot_dimension_numbers<[1], [0], [0], [1], [0, 0, 1, 1], [], []>} : vector<4x32xbf16>, vector<32x128xbf16>, vector<4x128xf32> -> vector<4x128xf32>
    %228 = arith.addf %225, %227 : vector<4x128xf32>
    %229 = vector.extract_strided_slice %228 {offsets = [0, 0], sizes = [4, 96], strides = [1, 1]} : vector<4x128xf32> to vector<4x96xf32>
    %230 = arith.negf %229 : vector<4x96xf32>
    %231 = math.exp %230 : vector<4x96xf32>
    %cst_35 = arith.constant 1.000000e+00 : f32
    %232 = vector.broadcast %cst_35 : f32 to vector<4x96xf32>
    %233 = arith.addf %232, %231 : vector<4x96xf32>
    %234 = arith.divf %232, %233 : vector<4x96xf32>
    %235 = vector.extract_strided_slice %228 {offsets = [0, 96], sizes = [4, 32], strides = [1, 1]} : vector<4x128xf32> to vector<4x32xf32>
    %236 = math.tanh %235 : vector<4x32xf32>
    %237 = vector.extract_strided_slice %234 {offsets = [0, 0], sizes = [4, 32], strides = [1, 1]} : vector<4x96xf32> to vector<4x32xf32>
    %238 = vector.extract_strided_slice %234 {offsets = [0, 32], sizes = [4, 32], strides = [1, 1]} : vector<4x96xf32> to vector<4x32xf32>
    %239 = vector.extract_strided_slice %234 {offsets = [0, 64], sizes = [4, 32], strides = [1, 1]} : vector<4x96xf32> to vector<4x32xf32>
    %240 = arith.mulf %238, %198 : vector<4x32xf32>
    %241 = arith.mulf %237, %236 : vector<4x32xf32>
    %242 = arith.addf %240, %241 : vector<4x32xf32>
    %243 = math.tanh %242 : vector<4x32xf32>
    %244 = arith.mulf %239, %243 : vector<4x32xf32>
    %245 = arith.truncf %244 : vector<4x32xf32> to vector<4x32xbf16>
    %cst_36 = arith.constant dense<0.000000e+00> : vector<4x128xf32>
    %246 = tpu.matmul %245, %5, %cst_36 {dimension_numbers = #tpu.dot_dimension_numbers<[1], [0], [0], [1], [0, 0, 1, 1], [], []>} : vector<4x32xbf16>, vector<32x128xbf16>, vector<4x128xf32> -> vector<4x128xf32>
    %247 = arith.truncf %223 : vector<4x32xf32> to vector<4x32xbf16>
    %cst_37 = arith.constant dense<0.000000e+00> : vector<4x128xf32>
    %248 = tpu.matmul %247, %6, %cst_37 {dimension_numbers = #tpu.dot_dimension_numbers<[1], [0], [0], [1], [0, 0, 1, 1], [], []>} : vector<4x32xbf16>, vector<32x128xbf16>, vector<4x128xf32> -> vector<4x128xf32>
    %249 = arith.addf %246, %248 : vector<4x128xf32>
    %250 = vector.broadcast %2 : vector<1x128xf32> to vector<4x128xf32>
    %251 = arith.addf %249, %250 : vector<4x128xf32>
    %252 = vector.extract_strided_slice %251 {offsets = [0, 0], sizes = [4, 96], strides = [1, 1]} : vector<4x128xf32> to vector<4x96xf32>
    %253 = arith.negf %252 : vector<4x96xf32>
    %254 = math.exp %253 : vector<4x96xf32>
    %cst_38 = arith.constant 1.000000e+00 : f32
    %255 = vector.broadcast %cst_38 : f32 to vector<4x96xf32>
    %256 = arith.addf %255, %254 : vector<4x96xf32>
    %257 = arith.divf %255, %256 : vector<4x96xf32>
    %258 = vector.extract_strided_slice %251 {offsets = [0, 96], sizes = [4, 32], strides = [1, 1]} : vector<4x128xf32> to vector<4x32xf32>
    %259 = math.tanh %258 : vector<4x32xf32>
    %260 = vector.extract_strided_slice %257 {offsets = [0, 0], sizes = [4, 32], strides = [1, 1]} : vector<4x96xf32> to vector<4x32xf32>
    %261 = vector.extract_strided_slice %257 {offsets = [0, 32], sizes = [4, 32], strides = [1, 1]} : vector<4x96xf32> to vector<4x32xf32>
    %262 = vector.extract_strided_slice %257 {offsets = [0, 64], sizes = [4, 32], strides = [1, 1]} : vector<4x96xf32> to vector<4x32xf32>
    %263 = arith.mulf %261, %221 : vector<4x32xf32>
    %264 = arith.mulf %260, %259 : vector<4x32xf32>
    %265 = arith.addf %263, %264 : vector<4x32xf32>
    %266 = math.tanh %265 : vector<4x32xf32>
    %267 = arith.mulf %262, %266 : vector<4x32xf32>
    %268 = vector.extract_strided_slice %15 {offsets = [6, 0, 0], sizes = [1, 4, 128], strides = [1, 1, 1]} : vector<8x4x128xf32> to vector<1x4x128xf32>
    %269 = vector.shape_cast %268 : vector<1x4x128xf32> to vector<4x128xf32>
    %270 = arith.truncf %244 : vector<4x32xf32> to vector<4x32xbf16>
    %cst_39 = arith.constant dense<0.000000e+00> : vector<4x128xf32>
    %271 = tpu.matmul %270, %4, %cst_39 {dimension_numbers = #tpu.dot_dimension_numbers<[1], [0], [0], [1], [0, 0, 1, 1], [], []>} : vector<4x32xbf16>, vector<32x128xbf16>, vector<4x128xf32> -> vector<4x128xf32>
    %272 = arith.addf %269, %271 : vector<4x128xf32>
    %273 = vector.extract_strided_slice %272 {offsets = [0, 0], sizes = [4, 96], strides = [1, 1]} : vector<4x128xf32> to vector<4x96xf32>
    %274 = arith.negf %273 : vector<4x96xf32>
    %275 = math.exp %274 : vector<4x96xf32>
    %cst_40 = arith.constant 1.000000e+00 : f32
    %276 = vector.broadcast %cst_40 : f32 to vector<4x96xf32>
    %277 = arith.addf %276, %275 : vector<4x96xf32>
    %278 = arith.divf %276, %277 : vector<4x96xf32>
    %279 = vector.extract_strided_slice %272 {offsets = [0, 96], sizes = [4, 32], strides = [1, 1]} : vector<4x128xf32> to vector<4x32xf32>
    %280 = math.tanh %279 : vector<4x32xf32>
    %281 = vector.extract_strided_slice %278 {offsets = [0, 0], sizes = [4, 32], strides = [1, 1]} : vector<4x96xf32> to vector<4x32xf32>
    %282 = vector.extract_strided_slice %278 {offsets = [0, 32], sizes = [4, 32], strides = [1, 1]} : vector<4x96xf32> to vector<4x32xf32>
    %283 = vector.extract_strided_slice %278 {offsets = [0, 64], sizes = [4, 32], strides = [1, 1]} : vector<4x96xf32> to vector<4x32xf32>
    %284 = arith.mulf %282, %242 : vector<4x32xf32>
    %285 = arith.mulf %281, %280 : vector<4x32xf32>
    %286 = arith.addf %284, %285 : vector<4x32xf32>
    %287 = math.tanh %286 : vector<4x32xf32>
    %288 = arith.mulf %283, %287 : vector<4x32xf32>
    %289 = arith.truncf %288 : vector<4x32xf32> to vector<4x32xbf16>
    %cst_41 = arith.constant dense<0.000000e+00> : vector<4x128xf32>
    %290 = tpu.matmul %289, %5, %cst_41 {dimension_numbers = #tpu.dot_dimension_numbers<[1], [0], [0], [1], [0, 0, 1, 1], [], []>} : vector<4x32xbf16>, vector<32x128xbf16>, vector<4x128xf32> -> vector<4x128xf32>
    %291 = arith.truncf %267 : vector<4x32xf32> to vector<4x32xbf16>
    %cst_42 = arith.constant dense<0.000000e+00> : vector<4x128xf32>
    %292 = tpu.matmul %291, %6, %cst_42 {dimension_numbers = #tpu.dot_dimension_numbers<[1], [0], [0], [1], [0, 0, 1, 1], [], []>} : vector<4x32xbf16>, vector<32x128xbf16>, vector<4x128xf32> -> vector<4x128xf32>
    %293 = arith.addf %290, %292 : vector<4x128xf32>
    %294 = vector.broadcast %2 : vector<1x128xf32> to vector<4x128xf32>
    %295 = arith.addf %293, %294 : vector<4x128xf32>
    %296 = vector.extract_strided_slice %295 {offsets = [0, 0], sizes = [4, 96], strides = [1, 1]} : vector<4x128xf32> to vector<4x96xf32>
    %297 = arith.negf %296 : vector<4x96xf32>
    %298 = math.exp %297 : vector<4x96xf32>
    %cst_43 = arith.constant 1.000000e+00 : f32
    %299 = vector.broadcast %cst_43 : f32 to vector<4x96xf32>
    %300 = arith.addf %299, %298 : vector<4x96xf32>
    %301 = arith.divf %299, %300 : vector<4x96xf32>
    %302 = vector.extract_strided_slice %295 {offsets = [0, 96], sizes = [4, 32], strides = [1, 1]} : vector<4x128xf32> to vector<4x32xf32>
    %303 = math.tanh %302 : vector<4x32xf32>
    %304 = vector.extract_strided_slice %301 {offsets = [0, 0], sizes = [4, 32], strides = [1, 1]} : vector<4x96xf32> to vector<4x32xf32>
    %305 = vector.extract_strided_slice %301 {offsets = [0, 32], sizes = [4, 32], strides = [1, 1]} : vector<4x96xf32> to vector<4x32xf32>
    %306 = vector.extract_strided_slice %301 {offsets = [0, 64], sizes = [4, 32], strides = [1, 1]} : vector<4x96xf32> to vector<4x32xf32>
    %307 = arith.mulf %305, %265 : vector<4x32xf32>
    %308 = arith.mulf %304, %303 : vector<4x32xf32>
    %309 = arith.addf %307, %308 : vector<4x32xf32>
    %310 = math.tanh %309 : vector<4x32xf32>
    %311 = arith.mulf %306, %310 : vector<4x32xf32>
    %312 = vector.extract_strided_slice %15 {offsets = [7, 0, 0], sizes = [1, 4, 128], strides = [1, 1, 1]} : vector<8x4x128xf32> to vector<1x4x128xf32>
    %313 = vector.shape_cast %312 : vector<1x4x128xf32> to vector<4x128xf32>
    %314 = arith.truncf %288 : vector<4x32xf32> to vector<4x32xbf16>
    %cst_44 = arith.constant dense<0.000000e+00> : vector<4x128xf32>
    %315 = tpu.matmul %314, %4, %cst_44 {dimension_numbers = #tpu.dot_dimension_numbers<[1], [0], [0], [1], [0, 0, 1, 1], [], []>} : vector<4x32xbf16>, vector<32x128xbf16>, vector<4x128xf32> -> vector<4x128xf32>
    %316 = arith.addf %313, %315 : vector<4x128xf32>
    %317 = vector.extract_strided_slice %316 {offsets = [0, 0], sizes = [4, 96], strides = [1, 1]} : vector<4x128xf32> to vector<4x96xf32>
    %318 = arith.negf %317 : vector<4x96xf32>
    %319 = math.exp %318 : vector<4x96xf32>
    %cst_45 = arith.constant 1.000000e+00 : f32
    %320 = vector.broadcast %cst_45 : f32 to vector<4x96xf32>
    %321 = arith.addf %320, %319 : vector<4x96xf32>
    %322 = arith.divf %320, %321 : vector<4x96xf32>
    %323 = vector.extract_strided_slice %316 {offsets = [0, 96], sizes = [4, 32], strides = [1, 1]} : vector<4x128xf32> to vector<4x32xf32>
    %324 = math.tanh %323 : vector<4x32xf32>
    %325 = vector.extract_strided_slice %322 {offsets = [0, 0], sizes = [4, 32], strides = [1, 1]} : vector<4x96xf32> to vector<4x32xf32>
    %326 = vector.extract_strided_slice %322 {offsets = [0, 32], sizes = [4, 32], strides = [1, 1]} : vector<4x96xf32> to vector<4x32xf32>
    %327 = vector.extract_strided_slice %322 {offsets = [0, 64], sizes = [4, 32], strides = [1, 1]} : vector<4x96xf32> to vector<4x32xf32>
    %328 = arith.mulf %326, %286 : vector<4x32xf32>
    %329 = arith.mulf %325, %324 : vector<4x32xf32>
    %330 = arith.addf %328, %329 : vector<4x32xf32>
    %331 = math.tanh %330 : vector<4x32xf32>
    %332 = arith.mulf %327, %331 : vector<4x32xf32>
    %333 = arith.truncf %332 : vector<4x32xf32> to vector<4x32xbf16>
    %cst_46 = arith.constant dense<0.000000e+00> : vector<4x128xf32>
    %334 = tpu.matmul %333, %5, %cst_46 {dimension_numbers = #tpu.dot_dimension_numbers<[1], [0], [0], [1], [0, 0, 1, 1], [], []>} : vector<4x32xbf16>, vector<32x128xbf16>, vector<4x128xf32> -> vector<4x128xf32>
    %335 = arith.truncf %311 : vector<4x32xf32> to vector<4x32xbf16>
    %cst_47 = arith.constant dense<0.000000e+00> : vector<4x128xf32>
    %336 = tpu.matmul %335, %6, %cst_47 {dimension_numbers = #tpu.dot_dimension_numbers<[1], [0], [0], [1], [0, 0, 1, 1], [], []>} : vector<4x32xbf16>, vector<32x128xbf16>, vector<4x128xf32> -> vector<4x128xf32>
    %337 = arith.addf %334, %336 : vector<4x128xf32>
    %338 = vector.broadcast %2 : vector<1x128xf32> to vector<4x128xf32>
    %339 = arith.addf %337, %338 : vector<4x128xf32>
    %340 = vector.extract_strided_slice %339 {offsets = [0, 0], sizes = [4, 96], strides = [1, 1]} : vector<4x128xf32> to vector<4x96xf32>
    %341 = arith.negf %340 : vector<4x96xf32>
    %342 = math.exp %341 : vector<4x96xf32>
    %cst_48 = arith.constant 1.000000e+00 : f32
    %343 = vector.broadcast %cst_48 : f32 to vector<4x96xf32>
    %344 = arith.addf %343, %342 : vector<4x96xf32>
    %345 = arith.divf %343, %344 : vector<4x96xf32>
    %346 = vector.extract_strided_slice %339 {offsets = [0, 96], sizes = [4, 32], strides = [1, 1]} : vector<4x128xf32> to vector<4x32xf32>
    %347 = math.tanh %346 : vector<4x32xf32>
    %348 = vector.extract_strided_slice %345 {offsets = [0, 0], sizes = [4, 32], strides = [1, 1]} : vector<4x96xf32> to vector<4x32xf32>
    %349 = vector.extract_strided_slice %345 {offsets = [0, 32], sizes = [4, 32], strides = [1, 1]} : vector<4x96xf32> to vector<4x32xf32>
    %350 = vector.extract_strided_slice %345 {offsets = [0, 64], sizes = [4, 32], strides = [1, 1]} : vector<4x96xf32> to vector<4x32xf32>
    %351 = arith.mulf %349, %309 : vector<4x32xf32>
    %352 = arith.mulf %348, %347 : vector<4x32xf32>
    %353 = arith.addf %351, %352 : vector<4x32xf32>
    %354 = math.tanh %353 : vector<4x32xf32>
    %355 = arith.mulf %350, %354 : vector<4x32xf32>
    %356 = arith.truncf %355 : vector<4x32xf32> to vector<4x32xbf16>
    %cst_49 = arith.constant dense<0.000000e+00> : vector<4x128xf32>
    %357 = tpu.matmul %356, %7, %cst_49 {dimension_numbers = #tpu.dot_dimension_numbers<[1], [0], [0], [1], [0, 0, 1, 1], [], []>} : vector<4x32xbf16>, vector<32x128xbf16>, vector<4x128xf32> -> vector<4x128xf32>
    %358 = vector.broadcast %3 : vector<1x128xf32> to vector<4x128xf32>
    %359 = arith.addf %357, %358 : vector<4x128xf32>
    %360 = vector.extract_strided_slice %359 {offsets = [0, 0], sizes = [4, 1], strides = [1, 1]} : vector<4x128xf32> to vector<4x1xf32>
    %c0_50 = arith.constant 0 : index
    %c0_51 = arith.constant 0 : index
    %361 = vector.load %arg3[%c0_50, %c0_51] : memref<4x1xf32, #tpu.memory_space<vmem>>, vector<4x1xf32>
    tpu.vector_store %arg3[%c0_50, %c0_51], %360 {strides = array<i32>} : memref<4x1xf32, #tpu.memory_space<vmem>>, vector<4x1xf32>,
    return
  }
}

</mosaic_0001>

<bundles_post_ra>
// kernel: tpu_custom_call.1
= control target key start
LH: loop header
LB: loop body
LE: loop exit
PB: predicated region body
PF: predicated region fallthrough
CT: control target
= control target key end

     0   :  { %8 = vsyncpa [#allocation3], 0  ;;  %s2091_s12 = smov [#allocation2]   ;;  %s2486_s0 = inlined_call_operand.vmem [shape: f32[8,4,1], index: 0, kind: input, shape index: {}]   ;;  %s2487_s1 = inlined_call_operand.hbm [shape: bf16[128,128], index: 1, kind: input, shape index: {}]   ;;  %s2488_s2 = inlined_call_operand.vmem [shape: f32[4,128], index: 2, kind: input, shape index: {}]   ;;  %s2489_s3 = inlined_call_operand.vmem [shape: f32[4,1], index: 3, kind: output, shape index: {}]  }
   0x1   :  { %s16_s13 = sshll.u32 %s2091_s12, 4  ;;  %s2067_s16 = scalar_lea.hbm %s2487_s1, 1024  ;;  %s17_s13 = int_to_ptr.vmem [resolvable:$true] %s16_s13 }
   0x2   :  { %p2068_p0 = scmp.ne.s32.totalorder %s2487_s1, %s2067_s16  ;;  %p2071_p1 = scmp.lt.u32.totalorder %s2067_s16, %s2487_s1 }
   0x4   :  { %p2073_p2 = pnand %p2071_p1, %p2068_p0 }
   0x6   :  { %2076 = shalt.err (!%p2073_p2)
}
   0x7   :  { %s2077_s21 = scalar_lea.vmem %s17_s13, 1024  ;;  %p2082_p4 = scmp.lt.s32.totalorder %s17_s13, %s17_s13 }
   0x8   :  { %p2078_p3 = scmp.ne.s32.totalorder %s17_s13, %s2077_s21  ;;  %p2083_p5 = scmp.lt.s32.totalorder %s2077_s21, %s2077_s21 }
   0xa   :  { %p2084_p6 = por %p2083_p5, %p2082_p4 }
   0xc   :  { %p2085_p7 = pnand %p2084_p6, %p2078_p3 }
   0xe   :  { %2088 = shalt.err (!%p2085_p7)
}
   0xf   :  { %s2092_s22 = smov 64   ;;  %s2093_s23 = smov 4  }
  0x10   :  { %22 = dma.hbm_to_vmem [thread:$0]  %s2487_s1, 1024, %s17_s13, [#allocation3], %s2092_s22, %s2092_s22, %s2093_s23  }
  0x11   :  { %2089 = dma.done.wait [#allocation3], 1024  }
  0x12   :  { %2090 = vsyncadd [#allocation3], 4294966272  ;;  %v2094_v0 = vmov 0   ;;  %v49_v1 = vld [vmem:[%s2486_s0] sm:$0xf]  ;;  %s2095_s1 = smov 32  }
  0x13   :  { %1922 = vset.pattern.permute.xlu0 %v2094_v0  ;;  %1923 = vset.pattern.permute.xlu1 %v2094_v0  ;;  %v2138_v2 = vld [vmem:[%s2488_s2] ss:$0 sm:$0xff]  ;;  %v2143_v4 = vld [vmem:[%s2488_s2 + $0x1] ss:$0 sm:$0xff]  ;;  %v50_v8 = vld [vmem:[%s2486_s0 + $0x4] sm:$0xf] }
  0x14   :  { %59 = vperm.xlu0 %1922, %v49_v1   ;;  %v2152_v15 = vld [vmem:[#allocation2 + $0x10] sm:$0xff]   ;;  %v2154_v16 = vld [vmem:[#allocation2] sm:$0xff]   ;;  %v2096_v17 = vmov 0.0   ;;  %v2160_v18 = vld [vmem:[#allocation2 + $0x18] sm:$0xff]   ;;  %vm2097_vm0 = vmmov 0   ;;  %vm159_vm1 = vcmask 261120  }
  0x15   :  { %1731 = vmatprep.subr.bf16.mxu0 %v2096_v17  ;;  %1739 = vmatprep.subr.bf16.mxu1 %v2096_v17  ;;  %v2162_v19 = vld [vmem:[#allocation2 + $0x8] sm:$0xff]   ;;  %v2191_v30 = vld [vmem:[%s2488_s2 + $0x2] ss:$0 sm:$0xff]  ;;  %vm1604_vm2 = vcmask 3072  }
  0x16   :  { %1732 = vmatpush3.bf16.msra.mxu0 %v2152_v15  ;;  %1740 = vmatpush3.bf16.msra.mxu1 %v2154_v16  ;;  %v2201_v55 = vld [vmem:[#allocation2 + $0x20] sm:$0xff]   ;;  %v2207_v59 = vld [vmem:[#allocation2 + $0x28] sm:$0xff]  }
  0x17   :  { %1733 = vmatprep.subr.bf16.mxu0 %v2096_v17  ;;  %1741 = vmatprep.subr.bf16.mxu1 %v2096_v17  ;;  %v51_v0 = vld [vmem:[%s2486_s0 + $0x8] sm:$0xf] }
  0x18   :  { %1735 = vmatprep.mubr.msk.bf16.mxu0 %vm2097_vm0, %v2096_v17  ;;  %1743 = vmatprep.mubr.msk.bf16.mxu1 %vm2097_vm0, %v2096_v17 }
  0x1a   :  { %1734 = vmatpush3.bf16.msra.mxu0 %v2160_v18  ;;  %1742 = vmatpush3.bf16.msra.mxu1 %v2162_v19 }
  0x1b   :  { %1747 = vmatprep.subr.bf16.mxu0 %v2096_v17  ;;  %1755 = vmatprep.subr.bf16.mxu1 %v2096_v17 }
  0x93   :  { %v60_v3 = vpop.permute.xlu0 %59 }
  0x94   :  { %v101_v5 = vmul.f32 %v2138_v2, %v60_v3 }
  0x96   :  { %v113_v6 = vadd.f32 %v2143_v4, %v101_v5 }
  0x98   :  { %1932 = vtanh.f32 %v113_v6  ;;  %v1613_v9 = vmul.f32 -1.442695, %v113_v6 }
  0x9a   :  { %1934 = vpow2.f32 %v1613_v9 }
  0xa2   :  { %v1933_v7 = vpop.eup %1932 }
  0xa3   :  { %129 = vrot.lane.b32.xlu0 %v1933_v7, %s2095_s1 }
  0xa4   :  { %v1935_v10 = vpop.eup %1934 }
  0xa5   :  { %v124_v11 = vadd.f32 1.0, %v1935_v10 }
  0xa7   :  { %64 = vperm.xlu0 %1922, %v50_v8   ;;  %1936 = vrcp.f32 %v124_v11 }
  0xb1   :  { %v1937_v12 = vpop.eup %1936 }
 0x115   :  { %v130_v13 = vpop.permute.xlu0 %129 }
 0x116   :  { %v132_v14 = vmul.f32 %v1937_v12, %v130_v13 }
 0x118   :  { %282 = vrot.lane.b32.xlu0 %v132_v14, %s2095_s1  ;;  %1938 = vtanh.f32 %v132_v14 }
 0x122   :  { %v1939_v20 = vpop.eup %1938 }
 0x123   :  { %135 = vrot.lane.b32.xlu1 %v1939_v20, %s2092_s22 }
 0x126   :  { %v65_v25 = vpop.permute.xlu0 %64 }
 0x127   :  { %v102_v26 = vmul.f32 %v2138_v2, %v65_v25 }
 0x129   :  { %v114_v27 = vadd.f32 %v2143_v4, %v102_v26 }
 0x18a   :  { %v283_v54 = vpop.permute.xlu0 %282 }
 0x195   :  { %v136_v21 = vpop.permute.xlu1 %135 }
 0x196   :  { %v138_v22 = vmul.f32 %v1937_v12, %v136_v21 }
 0x198   :  { %v139_v23 = vpack.c.bf16 %v138_v22, %v138_v22 }
 0x19a   :  { %145 = vrot.lane.b32.xlu1 %v139_v23, %s2092_s22 }
 0x20c   :  { %v146_v24 = vpop.permute.xlu1 %145 }
 0x20d   :  { %1736 = vmatmul.mubr.msk.bf16.vlgmr.msra.gmra.mrb[0].mxu0 %vm159_vm1, %v146_v24  ;;  %1744 = vmatmul.mubr.msk.bf16.vlgmr.msra.gmra.mrb[0].mxu1 %vm159_vm1, %v146_v24 }
 0x20e   :  { %1751 = vmatprep.mubr.msk.bf16.mxu0 %vm2097_vm0, %v2096_v17  ;;  %1756 = vmatpush3.bf16.msra.mxu1 %v2152_v15 }
 0x20f   :  { %1757 = vmatprep.subr.bf16.mxu1 %v2096_v17  ;;  %1759 = vmatprep.mubr.msk.bf16.mxu1 %vm2097_vm0, %v2096_v17 }
 0x210   :  { %1748 = vmatpush3.bf16.msra.mxu0 %v2201_v55 }
 0x211   :  { %1749 = vmatprep.subr.bf16.mxu0 %v2096_v17 }
 0x212   :  { %1758 = vmatpush3.bf16.msra.mxu1 %v2160_v18 }
 0x213   :  { %1771 = vmatprep.subr.bf16.mxu1 %v2096_v17 }
 0x214   :  { %1750 = vmatpush3.bf16.msra.mxu0 %v2207_v59 }
 0x215   :  { %1763 = vmatprep.subr.bf16.mxu0 %v2096_v17 }
 0x2e0   :  { %v197_v28 = vpop.f32.mrb[0].mxu0  ;;  %v267_v29 = vpop.f32.mrb[0].mxu1 }
 0x2e1   :  { %v273_v31 = vadd.f32 %v267_v29, %v114_v27  ;;  %v1737_v32 = vpop.f32.mrb[1].mxu0  ;;  %v1745_v33 = vpop.f32.mrb[1].mxu1  ;;  %v198_v38 = vadd.f32 %v2191_v30, %v197_v28 }
 0x2e2   :  { %v200_v34 = vpop.f32.mrb[2].mxu0  ;;  %v270_v35 = vpop.f32.mrb[2].mxu1 }
 0x2e3   :  { %v1738_v36 = vpop.f32.mrb[3].mxu0  ;;  %v1746_v37 = vpop.f32.mrb[3].mxu1  ;;  %1940 = vtanh.f32 %v273_v31  ;;  %v1622_v41 = vmul.f32 -1.442695, %v273_v31  ;;  %v1618_v42 = vmul.f32 -1.442695, %v198_v38 }
 0x2e4   :  { %1942 = vtanh.f32 %v198_v38 }
 0x2e5   :  { %1944 = vpow2.f32 %v1622_v41 }
 0x2e6   :  { %1946 = vpow2.f32 %v1618_v42 }
 0x2ed   :  { %v1941_v39 = vpop.eup %1940 }
 0x2ee   :  { %287 = vrot.lane.b32.xlu1 %v1941_v39, %s2095_s1  ;;  %v1943_v40 = vpop.eup %1942 }
 0x2ef   :  { %v1945_v43 = vpop.eup %1944 }
 0x2f0   :  { %v277_v44 = vadd.f32 1.0, %v1945_v43  ;;  %v1947_v45 = vpop.eup %1946 }
 0x2f1   :  { %v206_v46 = vadd.f32 1.0, %v1947_v45 }
 0x2f2   :  { %211 = vrot.lane.b32.xlu1 %v1943_v40, %s2095_s1  ;;  %1948 = vrcp.f32 %v277_v44 }
 0x2f3   :  { %1950 = vrcp.f32 %v206_v46 }
 0x2fc   :  { %v1949_v47 = vpop.eup %1948 }
 0x2fd   :  { %v1951_v50 = vpop.eup %1950  ;;  %v285_v56 = vmul.f32 %v1949_v47, %v283_v54 }
 0x360   :  { %v288_v48 = vpop.permute.xlu1 %287 }
 0x361   :  { %v290_v49 = vmul.f32 %v1949_v47, %v288_v48 }
 0x363   :  { %292 = vrot.lane.b32.xlu0 %v290_v49, %s2095_s1 }
 0x364   :  { %v212_v51 = vpop.permute.xlu1 %211 }
 0x365   :  { %v2197_v52 = vmul.f32 %v1951_v50, %v212_v51 }
 0x367   :  { %1952 = vtanh.f32 %v2197_v52 }
 0x371   :  { %v1953_v53 = vpop.eup %1952 }
 0x372   :  { %217 = vrot.lane.b32.xlu1 %v1953_v53, %s2092_s22 }
 0x3d5   :  { %v293_v57 = vpop.permute.xlu0 %292 }
 0x3d6   :  { %v2204_v58 = vadd.f32 %v293_v57, %v285_v56 }
 0x3d8   :  { %1954 = vtanh.f32 %v2204_v58 }
 0x3e2   :  { %v1955_v60 = vpop.eup %1954 }
 0x3e3   :  { %298 = vrot.lane.b32.xlu0 %v1955_v60, %s2095_s1 }
 0x3e4   :  { %v218_v61 = vpop.permute.xlu1 %217 }
 0x3e5   :  { %v220_v62 = vmul.f32 %v1951_v50, %v218_v61 }
 0x3e7   :  { %v303_v63 = vpack.c.bf16 %v220_v62, %v220_v62 }
 0x3e9   :  { %305 = vrot.lane.b32.xlu1 %v303_v63, %s2092_s22  ;;  %v52_v63 = vld [vmem:[%s2486_s0 + $0xc] sm:$0xf] }
 0x3ed   :  { %69 = vperm.xlu1 %1923, %v51_v0  }
 0x455   :  { %v299_v1 = vpop.permute.xlu0 %298 }
 0x456   :  { %v301_v3 = vmul.f32 %v1949_v47, %v299_v1 }
 0x458   :  { %v302_v5 = vpack.c.bf16 %v301_v3, %v301_v3 }
 0x45a   :  { %363 = vrot.lane.b32.xlu0 %v302_v5, %s2092_s22 }
 0x45b   :  { %v306_v6 = vpop.permute.xlu1 %305 }
 0x45c   :  { %1752 = vmatmul.mubr.msk.bf16.vlgmr.msra.gmra.mrb[4].mxu0 %vm159_vm1, %v306_v6 }
 0x45d   :  { %1764 = vmatpush3.bf16.msra.mxu0 %v2154_v16  ;;  %1767 = vmatprep.mubr.msk.bf16.mxu0 %vm2097_vm0, %v2096_v17 }
 0x45e   :  { %1765 = vmatprep.subr.bf16.mxu0 %v2096_v17 }
 0x461   :  { %1766 = vmatpush3.bf16.msra.mxu0 %v2162_v19 }
 0x462   :  { %1779 = vmatprep.subr.bf16.mxu0 %v2096_v17 }
 0x46c   :  { %v70_v12 = vpop.permute.xlu1 %69 }
 0x46d   :  { %v103_v13 = vmul.f32 %v2138_v2, %v70_v12 }
 0x46f   :  { %v115_v14 = vadd.f32 %v2143_v4, %v103_v13 }
 0x4cc   :  { %v364_v7 = vpop.permute.xlu0 %363 }
 0x4cd   :  { %1760 = vmatmul.mubr.msk.bf16.vlgmr.msra.gmra.mrb[4].mxu1 %vm159_vm1, %v364_v7  ;;  %1768 = vmatmul.mubr.msk.bf16.vlgmr.msra.gmra.mrb[8].mxu0 %vm159_vm1, %v364_v7 }
 0x4ce   :  { %1780 = vmatpush3.bf16.msra.mxu0 %v2152_v15  ;;  %1772 = vmatpush3.bf16.msra.mxu1 %v2201_v55 }
 0x4cf   :  { %1781 = vmatprep.subr.bf16.mxu0 %v2096_v17  ;;  %1773 = vmatprep.subr.bf16.mxu1 %v2096_v17 }
 0x4d0   :  { %1783 = vmatprep.mubr.msk.bf16.mxu0 %vm2097_vm0, %v2096_v17  ;;  %1775 = vmatprep.mubr.msk.bf16.mxu1 %vm2097_vm0, %v2096_v17 }
 0x4d2   :  { %1782 = vmatpush3.bf16.msra.mxu0 %v2160_v18  ;;  %1774 = vmatpush3.bf16.msra.mxu1 %v2207_v59 }
 0x4d3   :  { %1787 = vmatprep.subr.bf16.mxu1 %v2096_v17  ;;  %1795 = vmatprep.subr.bf16.mxu0 %v2096_v17 }
 0x52f   :  { %v356_v8 = vpop.f32.mrb[4].mxu0 }
 0x530   :  { %v1753_v9 = vpop.f32.mrb[5].mxu0 }
 0x531   :  { %v359_v10 = vpop.f32.mrb[6].mxu0 }
 0x532   :  { %v1754_v11 = vpop.f32.mrb[7].mxu0 }
 0x5a0   :  { %v402_v20 = vpop.f32.mrb[4].mxu1  ;;  %v471_v21 = vpop.f32.mrb[8].mxu0 }
 0x5a1   :  { %v403_v22 = vadd.f32 %v402_v20, %v356_v8  ;;  %v477_v23 = vadd.f32 %v471_v21, %v115_v14  ;;  %v1761_v24 = vpop.f32.mrb[5].mxu1  ;;  %v1769_v25 = vpop.f32.mrb[9].mxu0 }
 0x5a2   :  { %v405_v26 = vpop.f32.mrb[6].mxu1  ;;  %v474_v27 = vpop.f32.mrb[10].mxu0 }
 0x5a3   :  { %v408_v28 = vadd.f32 %v2191_v30, %v403_v22  ;;  %1956 = vtanh.f32 %v477_v23  ;;  %v1762_v29 = vpop.f32.mrb[7].mxu1  ;;  %v1770_v31 = vpop.f32.mrb[11].mxu0  ;;  %v1629_v34 = vmul.f32 -1.442695, %v477_v23 }
 0x5a5   :  { %1958 = vtanh.f32 %v408_v28  ;;  %v1627_v35 = vmul.f32 -1.442695, %v408_v28 }
 0x5a6   :  { %1960 = vpow2.f32 %v1629_v34 }
 0x5a7   :  { %1962 = vpow2.f32 %v1627_v35 }
 0x5ad   :  { %v1957_v32 = vpop.eup %1956 }
 0x5ae   :  { %487 = vrot.lane.b32.xlu1 %v1957_v32, %s2095_s1 }
 0x5af   :  { %v1959_v33 = vpop.eup %1958 }
 0x5b0   :  { %422 = vrot.lane.b32.xlu0 %v1959_v33, %s2095_s1  ;;  %v1961_v36 = vpop.eup %1960 }
 0x5b1   :  { %v1963_v37 = vpop.eup %1962  ;;  %v481_v38 = vadd.f32 1.0, %v1961_v36 }
 0x5b2   :  { %v412_v39 = vadd.f32 1.0, %v1963_v37 }
 0x5b3   :  { %1964 = vrcp.f32 %v481_v38 }
 0x5b4   :  { %417 = vrot.lane.b32.xlu0 %v2197_v52, %s2095_s1  ;;  %1966 = vrcp.f32 %v412_v39 }
 0x5bd   :  { %v1965_v40 = vpop.eup %1964 }
 0x5be   :  { %v1967_v43 = vpop.eup %1966  ;;  %v485_v47 = vmul.f32 %v1965_v40, %v2204_v58 }
 0x620   :  { %v488_v41 = vpop.permute.xlu1 %487 }
 0x621   :  { %v490_v42 = vmul.f32 %v1965_v40, %v488_v41 }
 0x622   :  { %v423_v44 = vpop.permute.xlu0 %422 }
 0x623   :  { %v425_v45 = vmul.f32 %v1967_v43, %v423_v44  ;;  %492 = vrot.lane.b32.xlu0 %v490_v42, %s2095_s1 }
 0x625   :  { %427 = vrot.lane.b32.xlu1 %v425_v45, %s2095_s1 }
 0x626   :  { %v418_v46 = vpop.permute.xlu0 %417 }
 0x627   :  { %v420_v49 = vmul.f32 %v1967_v43, %v418_v46 }
 0x695   :  { %v493_v48 = vpop.permute.xlu0 %492 }
 0x696   :  { %v2249_v50 = vadd.f32 %v493_v48, %v485_v47 }
 0x697   :  { %v428_v51 = vpop.permute.xlu1 %427 }
 0x698   :  { %1968 = vtanh.f32 %v2249_v50  ;;  %v2252_v52 = vadd.f32 %v428_v51, %v420_v49 }
 0x69a   :  { %1970 = vtanh.f32 %v2252_v52 }
 0x6a2   :  { %v1969_v53 = vpop.eup %1968 }
 0x6a3   :  { %498 = vrot.lane.b32.xlu0 %v1969_v53, %s2095_s1 }
 0x6a4   :  { %v1971_v54 = vpop.eup %1970 }
 0x6a5   :  { %433 = vrot.lane.b32.xlu1 %v1971_v54, %s2095_s1 }
 0x715   :  { %v499_v56 = vpop.permute.xlu0 %498 }
 0x716   :  { %v501_v57 = vmul.f32 %v1965_v40, %v499_v56 }
 0x717   :  { %v434_v58 = vpop.permute.xlu1 %433 }
 0x718   :  { %v502_v60 = vpack.c.bf16 %v501_v57, %v501_v57  ;;  %v436_v61 = vmul.f32 %v1967_v43, %v434_v58 }
 0x71a   :  { %v503_v62 = vpack.c.bf16 %v436_v61, %v436_v61  ;;  %551 = vrot.lane.b32.xlu0 %v502_v60, %s2092_s22 }
 0x71c   :  { %505 = vrot.lane.b32.xlu1 %v503_v62, %s2092_s22 }
 0x720   :  { %74 = vperm.xlu1 %1923, %v52_v63  }
 0x78c   :  { %v552_v0 = vpop.permute.xlu0 %551 }
 0x78d   :  { %1784 = vmatmul.mubr.msk.bf16.vlgmr.msra.gmra.mrb[12].mxu0 %vm159_vm1, %v552_v0 }
 0x78e   :  { %v506_v1 = vpop.permute.xlu1 %505  ;;  %1796 = vmatpush3.bf16.msra.mxu0 %v2201_v55  ;;  %1799 = vmatprep.mubr.msk.bf16.mxu0 %vm2097_vm0, %v2096_v17 }
 0x78f   :  { %1776 = vmatmul.mubr.msk.bf16.vlgmr.msra.gmra.mrb[8].mxu1 %vm159_vm1, %v506_v1  ;;  %1797 = vmatprep.subr.bf16.mxu0 %v2096_v17 }
 0x790   :  { %1788 = vmatpush3.bf16.msra.mxu1 %v2154_v16  ;;  %1791 = vmatprep.mubr.msk.bf16.mxu1 %vm2097_vm0, %v2096_v17 }
 0x791   :  { %1789 = vmatprep.subr.bf16.mxu1 %v2096_v17 }
 0x792   :  { %1798 = vmatpush3.bf16.msra.mxu0 %v2207_v59 }
 0x793   :  { %1811 = vmatprep.subr.bf16.mxu0 %v2096_v17 }
 0x794   :  { %1790 = vmatpush3.bf16.msra.mxu1 %v2162_v19 }
 0x795   :  { %1803 = vmatprep.subr.bf16.mxu1 %v2096_v17 }
 0x797   :  { %1792 = vmatmul.mubr.msk.bf16.vlgmr.msra.gmra.mrb[12].mxu1 %vm159_vm1, %v552_v0 }
 0x798   :  { %1804 = vmatpush3.bf16.msra.mxu1 %v2152_v15  ;;  %1807 = vmatprep.mubr.msk.bf16.mxu1 %vm2097_vm0, %v2096_v17 }
 0x799   :  { %1805 = vmatprep.subr.bf16.mxu1 %v2096_v17 }
 0x79c   :  { %1806 = vmatpush3.bf16.msra.mxu1 %v2160_v18 }
 0x79d   :  { %1819 = vmatprep.subr.bf16.mxu1 %v2096_v17 }
 0x79f   :  { %v75_v5 = vpop.permute.xlu1 %74 }
 0x7a0   :  { %v104_v13 = vmul.f32 %v2138_v2, %v75_v5 }
 0x7a2   :  { %v116_v21 = vadd.f32 %v2143_v4, %v104_v13 }
 0x860   :  { %v590_v3 = vpop.f32.mrb[12].mxu0 }
 0x861   :  { %v1785_v6 = vpop.f32.mrb[13].mxu0 }
 0x862   :  { %v544_v7 = vpop.f32.mrb[8].mxu1  ;;  %v593_v8 = vpop.f32.mrb[14].mxu0 }
 0x863   :  { %v591_v9 = vadd.f32 %v590_v3, %v544_v7  ;;  %v1777_v10 = vpop.f32.mrb[9].mxu1  ;;  %v1786_v11 = vpop.f32.mrb[15].mxu0 }
 0x864   :  { %v547_v12 = vpop.f32.mrb[10].mxu1 }
 0x865   :  { %v596_v14 = vadd.f32 %v2191_v30, %v591_v9  ;;  %v1778_v20 = vpop.f32.mrb[11].mxu1 }
 0x867   :  { %1972 = vtanh.f32 %v596_v14  ;;  %v1632_v29 = vmul.f32 -1.442695, %v596_v14 }
 0x86a   :  { %v655_v22 = vpop.f32.mrb[12].mxu1 }
 0x86b   :  { %v661_v23 = vadd.f32 %v655_v22, %v116_v21  ;;  %v1793_v24 = vpop.f32.mrb[13].mxu1 }
 0x86c   :  { %v658_v25 = vpop.f32.mrb[14].mxu1 }
 0x86d   :  { %1974 = vtanh.f32 %v661_v23  ;;  %v1794_v26 = vpop.f32.mrb[15].mxu1  ;;  %v1634_v31 = vmul.f32 -1.442695, %v661_v23 }
 0x86e   :  { %1976 = vpow2.f32 %v1632_v29 }
 0x86f   :  { %1978 = vpow2.f32 %v1634_v31 }
 0x871   :  { %v1973_v27 = vpop.eup %1972 }
 0x872   :  { %606 = vrot.lane.b32.xlu0 %v1973_v27, %s2095_s1 }
 0x877   :  { %v1975_v28 = vpop.eup %1974 }
 0x878   :  { %671 = vrot.lane.b32.xlu1 %v1975_v28, %s2095_s1  ;;  %v1977_v32 = vpop.eup %1976 }
 0x879   :  { %v600_v33 = vadd.f32 1.0, %v1977_v32  ;;  %v1979_v34 = vpop.eup %1978 }
 0x87a   :  { %v665_v35 = vadd.f32 1.0, %v1979_v34 }
 0x87b   :  { %1980 = vrcp.f32 %v600_v33 }
 0x87c   :  { %1982 = vrcp.f32 %v665_v35 }
 0x885   :  { %v1981_v36 = vpop.eup %1980 }
 0x886   :  { %v1983_v39 = vpop.eup %1982  ;;  %v604_v42 = vmul.f32 %v1981_v36, %v2252_v52 }
 0x887   :  { %v669_v45 = vmul.f32 %v1983_v39, %v2249_v50  ;;  %v53_v50 = vld [vmem:[%s2486_s0 + $0x10] sm:$0xf] }
 0x8e4   :  { %v607_v37 = vpop.permute.xlu0 %606 }
 0x8e5   :  { %v609_v38 = vmul.f32 %v1981_v36, %v607_v37 }
 0x8e7   :  { %611 = vrot.lane.b32.xlu0 %v609_v38, %s2095_s1 }
 0x8ea   :  { %v672_v40 = vpop.permute.xlu1 %671 }
 0x8eb   :  { %v674_v41 = vmul.f32 %v1983_v39, %v672_v40 }
 0x8ed   :  { %676 = vrot.lane.b32.xlu1 %v674_v41, %s2095_s1 }
 0x959   :  { %v612_v43 = vpop.permute.xlu0 %611 }
 0x95a   :  { %v2291_v44 = vadd.f32 %v612_v43, %v604_v42 }
 0x95c   :  { %1984 = vtanh.f32 %v2291_v44 }
 0x95f   :  { %v677_v46 = vpop.permute.xlu1 %676 }
 0x960   :  { %v2295_v47 = vadd.f32 %v677_v46, %v669_v45 }
 0x962   :  { %1986 = vtanh.f32 %v2295_v47 }
 0x966   :  { %v1985_v48 = vpop.eup %1984 }
 0x967   :  { %617 = vrot.lane.b32.xlu0 %v1985_v48, %s2095_s1 }
 0x96c   :  { %v1987_v49 = vpop.eup %1986 }
 0x96d   :  { %682 = vrot.lane.b32.xlu1 %v1987_v49, %s2095_s1 }
 0x9d9   :  { %v618_v51 = vpop.permute.xlu0 %617 }
 0x9da   :  { %v620_v52 = vmul.f32 %v1981_v36, %v618_v51 }
 0x9dc   :  { %v687_v53 = vpack.c.bf16 %v620_v52, %v620_v52  ;;  %v54_v52 = vld [vmem:[%s2486_s0 + $0x14] sm:$0xf] }
 0x9de   :  { %689 = vrot.lane.b32.xlu0 %v687_v53, %s2092_s22 }
 0x9df   :  { %v683_v54 = vpop.permute.xlu1 %682 }
 0x9e0   :  { %v685_v56 = vmul.f32 %v1983_v39, %v683_v54 }
 0x9e2   :  { %v686_v57 = vpack.c.bf16 %v685_v56, %v685_v56  ;;  %79 = vperm.xlu0 %1922, %v53_v50  }
 0x9e4   :  { %735 = vrot.lane.b32.xlu1 %v686_v57, %s2092_s22 }
 0xa50   :  { %v690_v58 = vpop.permute.xlu0 %689 }
 0xa51   :  { %1800 = vmatmul.mubr.msk.bf16.vlgmr.msra.gmra.mrb[16].mxu0 %vm159_vm1, %v690_v58 }
 0xa52   :  { %1812 = vmatpush3.bf16.msra.mxu0 %v2154_v16  ;;  %1815 = vmatprep.mubr.msk.bf16.mxu0 %vm2097_vm0, %v2096_v17 }
 0xa53   :  { %1813 = vmatprep.subr.bf16.mxu0 %v2096_v17 }
 0xa56   :  { %v736_v60 = vpop.permute.xlu1 %735  ;;  %1814 = vmatpush3.bf16.msra.mxu0 %v2162_v19 }
 0xa57   :  { %1808 = vmatmul.mubr.msk.bf16.vlgmr.msra.gmra.mrb[16].mxu1 %vm159_vm1, %v736_v60  ;;  %1827 = vmatprep.subr.bf16.mxu0 %v2096_v17 }
 0xa58   :  { %1820 = vmatpush3.bf16.msra.mxu1 %v2201_v55  ;;  %1823 = vmatprep.mubr.msk.bf16.mxu1 %vm2097_vm0, %v2096_v17 }
 0xa59   :  { %1816 = vmatmul.mubr.msk.bf16.vlgmr.msra.gmra.mrb[20].mxu0 %vm159_vm1, %v736_v60  ;;  %1821 = vmatprep.subr.bf16.mxu1 %v2096_v17 }
 0xa5a   :  { %1828 = vmatpush3.bf16.msra.mxu0 %v2152_v15  ;;  %1831 = vmatprep.mubr.msk.bf16.mxu0 %vm2097_vm0, %v2096_v17 }
 0xa5b   :  { %1829 = vmatprep.subr.bf16.mxu0 %v2096_v17 }
 0xa5c   :  { %1822 = vmatpush3.bf16.msra.mxu1 %v2207_v59 }
 0xa5d   :  { %1835 = vmatprep.subr.bf16.mxu1 %v2096_v17 }
 0xa5e   :  { %1830 = vmatpush3.bf16.msra.mxu0 %v2160_v18 }
 0xa5f   :  { %1843 = vmatprep.subr.bf16.mxu0 %v2096_v17 }
 0xa61   :  { %v80_v61 = vpop.permute.xlu0 %79 }
 0xa62   :  { %v105_v1 = vmul.f32 %v2138_v2, %v80_v61 }
 0xa64   :  { %v117_v8 = vadd.f32 %v2143_v4, %v105_v1 }
 0xb24   :  { %v728_v62 = vpop.f32.mrb[16].mxu0 }
 0xb25   :  { %v1801_v63 = vpop.f32.mrb[17].mxu0 }
 0xb26   :  { %v731_v0 = vpop.f32.mrb[18].mxu0 }
 0xb27   :  { %v1802_v3 = vpop.f32.mrb[19].mxu0 }
 0xb2a   :  { %v774_v5 = vpop.f32.mrb[16].mxu1 }
 0xb2b   :  { %v775_v6 = vadd.f32 %v774_v5, %v728_v62  ;;  %v1809_v7 = vpop.f32.mrb[17].mxu1 }
 0xb2c   :  { %v777_v9 = vpop.f32.mrb[18].mxu1  ;;  %v839_v10 = vpop.f32.mrb[20].mxu0 }
 0xb2d   :  { %v780_v11 = vadd.f32 %v2191_v30, %v775_v6  ;;  %v845_v12 = vadd.f32 %v839_v10, %v117_v8  ;;  %v1810_v13 = vpop.f32.mrb[19].mxu1  ;;  %v1817_v14 = vpop.f32.mrb[21].mxu0 }
 0xb2e   :  { %v842_v20 = vpop.f32.mrb[22].mxu0 }
 0xb2f   :  { %1988 = vtanh.f32 %v780_v11  ;;  %v1818_v21 = vpop.f32.mrb[23].mxu0  ;;  %v1637_v24 = vmul.f32 -1.442695, %v780_v11  ;;  %v1639_v25 = vmul.f32 -1.442695, %v845_v12 }
 0xb30   :  { %1990 = vtanh.f32 %v845_v12 }
 0xb31   :  { %1992 = vpow2.f32 %v1637_v24 }
 0xb32   :  { %1994 = vpow2.f32 %v1639_v25 }
 0xb39   :  { %v1989_v22 = vpop.eup %1988 }
 0xb3a   :  { %v1991_v23 = vpop.eup %1990  ;;  %790 = vrot.lane.b32.xlu1 %v1989_v22, %s2095_s1 }
 0xb3b   :  { %855 = vrot.lane.b32.xlu0 %v1991_v23, %s2095_s1  ;;  %v1993_v26 = vpop.eup %1992 }
 0xb3c   :  { %v1995_v27 = vpop.eup %1994  ;;  %v784_v28 = vadd.f32 1.0, %v1993_v26 }
 0xb3d   :  { %v849_v29 = vadd.f32 1.0, %v1995_v27 }
 0xb3e   :  { %1996 = vrcp.f32 %v784_v28 }
 0xb3f   :  { %1998 = vrcp.f32 %v849_v29 }
 0xb48   :  { %v1997_v31 = vpop.eup %1996 }
 0xb49   :  { %v1999_v33 = vpop.eup %1998  ;;  %v788_v37 = vmul.f32 %v1997_v31, %v2291_v44 }
 0xb4a   :  { %v853_v39 = vmul.f32 %v1999_v33, %v2295_v47 }
 0xbac   :  { %v791_v32 = vpop.permute.xlu1 %790 }
 0xbad   :  { %v793_v34 = vmul.f32 %v1997_v31, %v791_v32  ;;  %v856_v35 = vpop.permute.xlu0 %855 }
 0xbae   :  { %v858_v36 = vmul.f32 %v1999_v33, %v856_v35 }
 0xbaf   :  { %795 = vrot.lane.b32.xlu1 %v793_v34, %s2095_s1 }
 0xbb0   :  { %860 = vrot.lane.b32.xlu0 %v858_v36, %s2095_s1 }
 0xc21   :  { %v796_v38 = vpop.permute.xlu1 %795 }
 0xc22   :  { %v2335_v40 = vadd.f32 %v796_v38, %v788_v37  ;;  %v861_v41 = vpop.permute.xlu0 %860 }
 0xc23   :  { %v2337_v42 = vadd.f32 %v861_v41, %v853_v39 }
 0xc24   :  { %2000 = vtanh.f32 %v2335_v40 }
 0xc25   :  { %2002 = vtanh.f32 %v2337_v42 }
 0xc2e   :  { %v2001_v43 = vpop.eup %2000 }
 0xc2f   :  { %v2003_v45 = vpop.eup %2002  ;;  %801 = vrot.lane.b32.xlu1 %v2001_v43, %s2095_s1 }
 0xc30   :  { %866 = vrot.lane.b32.xlu0 %v2003_v45, %s2095_s1 }
 0xca1   :  { %v802_v46 = vpop.permute.xlu1 %801 }
 0xca2   :  { %v804_v44 = vmul.f32 %v1997_v31, %v802_v46  ;;  %v867_v48 = vpop.permute.xlu0 %866 }
 0xca3   :  { %v869_v49 = vmul.f32 %v1999_v33, %v867_v48 }
 0xca4   :  { %v871_v47 = vpack.c.bf16 %v804_v44, %v804_v44 }
 0xca5   :  { %v870_v51 = vpack.c.bf16 %v869_v49, %v869_v49 }
 0xca6   :  { %873 = vrot.lane.b32.xlu1 %v871_v47, %s2092_s22 }
 0xca7   :  { %919 = vrot.lane.b32.xlu0 %v870_v51, %s2092_s22 }
 0xcaa   :  { %84 = vperm.xlu1 %1923, %v54_v52  }
 0xd18   :  { %v874_v53 = vpop.permute.xlu1 %873 }
 0xd19   :  { %v920_v54 = vpop.permute.xlu0 %919  ;;  %1824 = vmatmul.mubr.msk.bf16.vlgmr.msra.gmra.mrb[20].mxu1 %vm159_vm1, %v874_v53 }
 0xd1a   :  { %1832 = vmatmul.mubr.msk.bf16.vlgmr.msra.gmra.mrb[24].mxu0 %vm159_vm1, %v920_v54  ;;  %1836 = vmatpush3.bf16.msra.mxu1 %v2154_v16 }
 0xd1b   :  { %1837 = vmatprep.subr.bf16.mxu1 %v2096_v17  ;;  %1839 = vmatprep.mubr.msk.bf16.mxu1 %vm2097_vm0, %v2096_v17 }
 0xd1c   :  { %1844 = vmatpush3.bf16.msra.mxu0 %v2201_v55  ;;  %1847 = vmatprep.mubr.msk.bf16.mxu0 %vm2097_vm0, %v2096_v17 }
 0xd1d   :  { %1845 = vmatprep.subr.bf16.mxu0 %v2096_v17 }
 0xd1e   :  { %1838 = vmatpush3.bf16.msra.mxu1 %v2162_v19 }
 0xd1f   :  { %1851 = vmatprep.subr.bf16.mxu1 %v2096_v17 }
 0xd20   :  { %1846 = vmatpush3.bf16.msra.mxu0 %v2207_v59 }
 0xd21   :  { %1840 = vmatmul.mubr.msk.bf16.vlgmr.msra.gmra.mrb[24].mxu1 %vm159_vm1, %v920_v54  ;;  %1859 = vmatprep.subr.bf16.mxu0 %v2096_v17 }
 0xd22   :  { %1852 = vmatpush3.bf16.msra.mxu1 %v2152_v15  ;;  %1855 = vmatprep.mubr.msk.bf16.mxu1 %vm2097_vm0, %v2096_v17 }
 0xd23   :  { %1853 = vmatprep.subr.bf16.mxu1 %v2096_v17 }
 0xd26   :  { %1854 = vmatpush3.bf16.msra.mxu1 %v2160_v18 }
 0xd27   :  { %1867 = vmatprep.subr.bf16.mxu1 %v2096_v17 }
 0xd29   :  { %v85_v50 = vpop.permute.xlu1 %84 }
 0xd2a   :  { %v106_v63 = vmul.f32 %v2138_v2, %v85_v50 }
 0xd2c   :  { %v118_v6 = vadd.f32 %v2143_v4, %v106_v63 }
 0xdec   :  { %v912_v56 = vpop.f32.mrb[20].mxu1 }
 0xded   :  { %v958_v57 = vpop.f32.mrb[24].mxu0  ;;  %v1825_v58 = vpop.f32.mrb[21].mxu1 }
 0xdee   :  { %v959_v60 = vadd.f32 %v958_v57, %v912_v56  ;;  %v1833_v61 = vpop.f32.mrb[25].mxu0  ;;  %v915_v62 = vpop.f32.mrb[22].mxu1 }
 0xdef   :  { %v961_v0 = vpop.f32.mrb[26].mxu0  ;;  %v1826_v1 = vpop.f32.mrb[23].mxu1 }
 0xdf0   :  { %v964_v3 = vadd.f32 %v2191_v30, %v959_v60  ;;  %v1834_v5 = vpop.f32.mrb[27].mxu0 }
 0xdf2   :  { %2004 = vtanh.f32 %v964_v3  ;;  %v1642_v14 = vmul.f32 -1.442695, %v964_v3 }
 0xdf4   :  { %v1023_v7 = vpop.f32.mrb[24].mxu1 }
 0xdf5   :  { %v1029_v8 = vadd.f32 %v1023_v7, %v118_v6  ;;  %v1841_v9 = vpop.f32.mrb[25].mxu1 }
 0xdf6   :  { %v1026_v10 = vpop.f32.mrb[26].mxu1 }
 0xdf7   :  { %2006 = vtanh.f32 %v1029_v8  ;;  %v1842_v11 = vpop.f32.mrb[27].mxu1  ;;  %v1644_v20 = vmul.f32 -1.442695, %v1029_v8 }
 0xdf8   :  { %2008 = vpow2.f32 %v1642_v14 }
 0xdf9   :  { %2010 = vpow2.f32 %v1644_v20 }
 0xdfc   :  { %v2005_v12 = vpop.eup %2004 }
 0xdfd   :  { %974 = vrot.lane.b32.xlu0 %v2005_v12, %s2095_s1 }
 0xe01   :  { %v2007_v13 = vpop.eup %2006 }
 0xe02   :  { %1039 = vrot.lane.b32.xlu1 %v2007_v13, %s2095_s1  ;;  %v2009_v21 = vpop.eup %2008 }
 0xe03   :  { %v968_v22 = vadd.f32 1.0, %v2009_v21  ;;  %v2011_v23 = vpop.eup %2010 }
 0xe04   :  { %v1033_v24 = vadd.f32 1.0, %v2011_v23 }
 0xe05   :  { %2012 = vrcp.f32 %v968_v22 }
 0xe06   :  { %2014 = vrcp.f32 %v1033_v24 }
 0xe0f   :  { %v2013_v25 = vpop.eup %2012 }
 0xe10   :  { %v2015_v28 = vpop.eup %2014  ;;  %v972_v32 = vmul.f32 %v2013_v25, %v2335_v40 }
 0xe11   :  { %v1037_v35 = vmul.f32 %v2015_v28, %v2337_v42  ;;  %v55_v42 = vld [vmem:[%s2486_s0 + $0x18] sm:$0xf] }
 0xe6f   :  { %v975_v26 = vpop.permute.xlu0 %974 }
 0xe70   :  { %v977_v27 = vmul.f32 %v2013_v25, %v975_v26 }
 0xe72   :  { %979 = vrot.lane.b32.xlu0 %v977_v27, %s2095_s1 }
 0xe74   :  { %v1040_v29 = vpop.permute.xlu1 %1039 }
 0xe75   :  { %v1042_v31 = vmul.f32 %v2015_v28, %v1040_v29 }
 0xe77   :  { %1044 = vrot.lane.b32.xlu1 %v1042_v31, %s2095_s1 }
 0xee4   :  { %v980_v33 = vpop.permute.xlu0 %979 }
 0xee5   :  { %v2377_v34 = vadd.f32 %v980_v33, %v972_v32 }
 0xee7   :  { %2016 = vtanh.f32 %v2377_v34 }
 0xee9   :  { %v1045_v36 = vpop.permute.xlu1 %1044 }
 0xeea   :  { %v2381_v37 = vadd.f32 %v1045_v36, %v1037_v35  ;;  %v56_v35 = vld [vmem:[%s2486_s0 + $0x1c] sm:$0xf] }
 0xeec   :  { %2018 = vtanh.f32 %v2381_v37 }
 0xef1   :  { %v2017_v38 = vpop.eup %2016 }
 0xef2   :  { %985 = vrot.lane.b32.xlu0 %v2017_v38, %s2095_s1  ;;  %v2060_v38 = vld [vmem:[#allocation2] sm:$0xff]  }
 0xef6   :  { %v2019_v39 = vpop.eup %2018 }
 0xef7   :  { %1050 = vrot.lane.b32.xlu1 %v2019_v39, %s2095_s1  ;;  %v2061_v39 = vld [vmem:[#allocation2 + $0x8] sm:$0xff]  }
 0xf64   :  { %v986_v41 = vpop.permute.xlu0 %985 }
 0xf65   :  { %v988_v40 = vmul.f32 %v2013_v25, %v986_v41  ;;  %v2062_v41 = vld [vmem:[#allocation2 + $0x10] sm:$0xff]  }
 0xf67   :  { %v1055_v43 = vpack.c.bf16 %v988_v40, %v988_v40 }
 0xf69   :  { %1057 = vrot.lane.b32.xlu0 %v1055_v43, %s2092_s22  ;;  %v1051_v45 = vpop.permute.xlu1 %1050 }
 0xf6a   :  { %v1053_v46 = vmul.f32 %v2015_v28, %v1051_v45 }
 0xf6c   :  { %v1054_v44 = vpack.c.bf16 %v1053_v46, %v1053_v46 }
 0xf6d   :  { %89 = vperm.xlu0 %1922, %v55_v42  }
 0xf6e   :  { %1103 = vrot.lane.b32.xlu1 %v1054_v44, %s2092_s22 }
 0xfdb   :  { %v1058_v48 = vpop.permute.xlu0 %1057 }
 0xfdc   :  { %1848 = vmatmul.mubr.msk.bf16.vlgmr.msra.gmra.mrb[28].mxu0 %vm159_vm1, %v1058_v48  ;;  %v2064_v48 = vld [vmem:[%s2488_s2] ss:$0 sm:$0xff] }
 0xfdd   :  { %1860 = vmatpush3.bf16.msra.mxu0 %v2154_v16  ;;  %1863 = vmatprep.mubr.msk.bf16.mxu0 %vm2097_vm0, %v2096_v17 }
 0xfde   :  { %1861 = vmatprep.subr.bf16.mxu0 %v2096_v17 }
 0xfe0   :  { %v1104_v49 = vpop.permute.xlu1 %1103 }
 0xfe1   :  { %1862 = vmatpush3.bf16.msra.mxu0 %v2162_v19  ;;  %1856 = vmatmul.mubr.msk.bf16.vlgmr.msra.gmra.mrb[28].mxu1 %vm159_vm1, %v1104_v49 }
 0xfe2   :  { %1868 = vmatpush3.bf16.msra.mxu1 %v2201_v55  ;;  %1875 = vmatprep.subr.bf16.mxu0 %v2096_v17 }
 0xfe3   :  { %1869 = vmatprep.subr.bf16.mxu1 %v2096_v17  ;;  %1871 = vmatprep.mubr.msk.bf16.mxu1 %vm2097_vm0, %v2096_v17 }
 0xfe4   :  { %1864 = vmatmul.mubr.msk.bf16.vlgmr.msra.gmra.mrb[32].mxu0 %vm159_vm1, %v1104_v49 }
 0xfe5   :  { %1876 = vmatpush3.bf16.msra.mxu0 %v2152_v15  ;;  %1879 = vmatprep.mubr.msk.bf16.mxu0 %vm2097_vm0, %v2096_v17 }
 0xfe6   :  { %1870 = vmatpush3.bf16.msra.mxu1 %v2207_v59  ;;  %1877 = vmatprep.subr.bf16.mxu0 %v2096_v17 }
 0xfe7   :  { %1883 = vmatprep.subr.bf16.mxu1 %v2096_v17 }
 0xfe9   :  { %1878 = vmatpush3.bf16.msra.mxu0 %v2160_v18 }
 0xfea   :  { %1891 = vmatprep.subr.bf16.mxu0 %v2096_v17 }
 0xfec   :  { %v90_v16 = vpop.permute.xlu0 %89 }
 0xfed   :  { %v107_v52 = vmul.f32 %v2138_v2, %v90_v16 }
 0xfef   :  { %v119_v57 = vadd.f32 %v2143_v4, %v107_v52  ;;  %v2065_v52 = vld [vmem:[%s2488_s2 + $0x1] ss:$0 sm:$0xff] }
0x10af   :  { %v1096_v19 = vpop.f32.mrb[28].mxu0 }
0x10b0   :  { %v1849_v47 = vpop.f32.mrb[29].mxu0 }
0x10b1   :  { %v1099_v51 = vpop.f32.mrb[30].mxu0 }
0x10b2   :  { %v1850_v15 = vpop.f32.mrb[31].mxu0 }
0x10b4   :  { %v1142_v53 = vpop.f32.mrb[28].mxu1 }
0x10b5   :  { %v1143_v54 = vadd.f32 %v1142_v53, %v1096_v19  ;;  %v1857_v50 = vpop.f32.mrb[29].mxu1 }
0x10b6   :  { %v1145_v56 = vpop.f32.mrb[30].mxu1 }
0x10b7   :  { %v1148_v58 = vadd.f32 %v2191_v30, %v1143_v54  ;;  %v1207_v60 = vpop.f32.mrb[32].mxu0  ;;  %v1858_v61 = vpop.f32.mrb[31].mxu1 }
0x10b8   :  { %v1213_v18 = vadd.f32 %v1207_v60, %v119_v57  ;;  %v1865_v62 = vpop.f32.mrb[33].mxu0 }
0x10b9   :  { %2020 = vtanh.f32 %v1148_v58  ;;  %v1210_v63 = vpop.f32.mrb[34].mxu0  ;;  %v1647_v2 = vmul.f32 -1.442695, %v1148_v58 }
0x10ba   :  { %2022 = vtanh.f32 %v1213_v18  ;;  %v1866_v0 = vpop.f32.mrb[35].mxu0  ;;  %v1649_v5 = vmul.f32 -1.442695, %v1213_v18 }
0x10bb   :  { %2024 = vpow2.f32 %v1647_v2 }
0x10bc   :  { %2026 = vpow2.f32 %v1649_v5 }
0x10c3   :  { %v2021_v1 = vpop.eup %2020 }
0x10c4   :  { %v2023_v3 = vpop.eup %2022  ;;  %1158 = vrot.lane.b32.xlu1 %v2021_v1, %s2095_s1 }
0x10c5   :  { %1223 = vrot.lane.b32.xlu0 %v2023_v3, %s2095_s1  ;;  %v2025_v4 = vpop.eup %2024 }
0x10c6   :  { %v2027_v6 = vpop.eup %2026  ;;  %v1152_v7 = vadd.f32 1.0, %v2025_v4 }
0x10c7   :  { %v1217_v8 = vadd.f32 1.0, %v2027_v6 }
0x10c8   :  { %2028 = vrcp.f32 %v1152_v7 }
0x10c9   :  { %2030 = vrcp.f32 %v1217_v8 }
0x10d2   :  { %v2029_v9 = vpop.eup %2028 }
0x10d3   :  { %v2031_v11 = vpop.eup %2030  ;;  %v1156_v20 = vmul.f32 %v2029_v9, %v2377_v34 }
0x10d4   :  { %v1221_v22 = vmul.f32 %v2031_v11, %v2381_v37 }
0x1136   :  { %v1159_v10 = vpop.permute.xlu1 %1158 }
0x1137   :  { %v1161_v12 = vmul.f32 %v2029_v9, %v1159_v10  ;;  %v1224_v13 = vpop.permute.xlu0 %1223 }
0x1138   :  { %v1226_v14 = vmul.f32 %v2031_v11, %v1224_v13 }
0x1139   :  { %1163 = vrot.lane.b32.xlu1 %v1161_v12, %s2095_s1 }
0x113a   :  { %1228 = vrot.lane.b32.xlu0 %v1226_v14, %s2095_s1 }
0x11ab   :  { %v1164_v21 = vpop.permute.xlu1 %1163 }
0x11ac   :  { %v2421_v23 = vadd.f32 %v1164_v21, %v1156_v20  ;;  %v1229_v24 = vpop.permute.xlu0 %1228 }
0x11ad   :  { %v2423_v25 = vadd.f32 %v1229_v24, %v1221_v22 }
0x11ae   :  { %2032 = vtanh.f32 %v2421_v23 }
0x11af   :  { %2034 = vtanh.f32 %v2423_v25 }
0x11b8   :  { %v2033_v26 = vpop.eup %2032 }
0x11b9   :  { %v2035_v27 = vpop.eup %2034  ;;  %1169 = vrot.lane.b32.xlu1 %v2033_v26, %s2095_s1 }
0x11ba   :  { %1234 = vrot.lane.b32.xlu0 %v2035_v27, %s2095_s1 }
0x122b   :  { %v1170_v28 = vpop.permute.xlu1 %1169 }
0x122c   :  { %v1172_v29 = vmul.f32 %v2029_v9, %v1170_v28  ;;  %v1235_v31 = vpop.permute.xlu0 %1234 }
0x122d   :  { %v1237_v32 = vmul.f32 %v2031_v11, %v1235_v31 }
0x122e   :  { %v1239_v33 = vpack.c.bf16 %v1172_v29, %v1172_v29 }
0x122f   :  { %v1238_v34 = vpack.c.bf16 %v1237_v32, %v1237_v32 }
0x1230   :  { %1241 = vrot.lane.b32.xlu1 %v1239_v33, %s2092_s22 }
0x1231   :  { %1287 = vrot.lane.b32.xlu0 %v1238_v34, %s2092_s22 }
0x1234   :  { %94 = vperm.xlu1 %1923, %v56_v35  }
0x12a2   :  { %v1242_v36 = vpop.permute.xlu1 %1241 }
0x12a3   :  { %v1288_v37 = vpop.permute.xlu0 %1287  ;;  %1872 = vmatmul.mubr.msk.bf16.vlgmr.msra.gmra.mrb[32].mxu1 %vm159_vm1, %v1242_v36 }
0x12a4   :  { %1880 = vmatmul.mubr.msk.bf16.vlgmr.msra.gmra.mrb[36].mxu0 %vm159_vm1, %v1288_v37  ;;  %1884 = vmatpush3.bf16.msra.mxu1 %v2060_v38 }
0x12a5   :  { %1885 = vmatprep.subr.bf16.mxu1 %v2096_v17  ;;  %1887 = vmatprep.mubr.msk.bf16.mxu1 %vm2097_vm0, %v2096_v17 }
0x12a6   :  { %1892 = vmatpush3.bf16.msra.mxu0 %v2201_v55  ;;  %1895 = vmatprep.mubr.msk.bf16.mxu0 %vm2097_vm0, %v2096_v17  ;;  %v2063_v55 = vld [vmem:[#allocation2 + $0x18] sm:$0xff]  }
0x12a7   :  { %1893 = vmatprep.subr.bf16.mxu0 %v2096_v17 }
0x12a8   :  { %1886 = vmatpush3.bf16.msra.mxu1 %v2061_v39 }
0x12a9   :  { %1899 = vmatprep.subr.bf16.mxu1 %v2096_v17 }
0x12aa   :  { %1894 = vmatpush3.bf16.msra.mxu0 %v2207_v59 }
0x12ab   :  { %1888 = vmatmul.mubr.msk.bf16.vlgmr.msra.gmra.mrb[36].mxu1 %vm159_vm1, %v1288_v37  ;;  %1907 = vmatprep.subr.bf16.mxu0 %v2096_v17  ;;  %v2066_v37 = vld [vmem:[%s2488_s2 + $0x2] ss:$0 sm:$0xff] }
0x12ac   :  { %1900 = vmatpush3.bf16.msra.mxu1 %v2062_v41  ;;  %1903 = vmatprep.mubr.msk.bf16.mxu1 %vm2097_vm0, %v2096_v17 }
0x12ad   :  { %1901 = vmatprep.subr.bf16.mxu1 %v2096_v17 }
0x12b0   :  { %1902 = vmatpush3.bf16.msra.mxu1 %v2063_v55 }
0x12b3   :  { %v95_v40 = vpop.permute.xlu1 %94 }
0x12b4   :  { %v108_v49 = vmul.f32 %v2064_v48, %v95_v40 }
0x12b6   :  { %v120_v15 = vadd.f32 %v2065_v52, %v108_v49  ;;  %v1930_v49 = vld [vmem:[#allocation2 + $0x30] sm:$0xff]  }
0x1376   :  { %v1280_v43 = vpop.f32.mrb[32].mxu1 }
0x1377   :  { %v1326_v45 = vpop.f32.mrb[36].mxu0  ;;  %v1873_v46 = vpop.f32.mrb[33].mxu1 }
0x1378   :  { %v1327_v42 = vadd.f32 %v1326_v45, %v1280_v43  ;;  %v1881_v44 = vpop.f32.mrb[37].mxu0  ;;  %v1283_v59 = vpop.f32.mrb[34].mxu1 }
0x1379   :  { %v1329_v16 = vpop.f32.mrb[38].mxu0  ;;  %v1874_v19 = vpop.f32.mrb[35].mxu1 }
0x137a   :  { %v1332_v47 = vadd.f32 %v2191_v30, %v1327_v42  ;;  %v1882_v51 = vpop.f32.mrb[39].mxu0  ;;  %v1931_v16 = vld [vmem:[#allocation2 + $0x38] sm:$0xff]  }
0x137c   :  { %2036 = vtanh.f32 %v1332_v47  ;;  %v1652_v30 = vmul.f32 -1.442695, %v1332_v47 }
0x137e   :  { %v1391_v53 = vpop.f32.mrb[36].mxu1 }
0x137f   :  { %v1397_v54 = vadd.f32 %v1391_v53, %v120_v15  ;;  %v1889_v50 = vpop.f32.mrb[37].mxu1  ;;  %v1658_v53 = vld [vmem:[%s2488_s2 + $0x3] ss:$0 sm:$0xff] }
0x1380   :  { %v1394_v56 = vpop.f32.mrb[38].mxu1 }
0x1381   :  { %2038 = vtanh.f32 %v1397_v54  ;;  %v1890_v57 = vpop.f32.mrb[39].mxu1  ;;  %v1654_v61 = vmul.f32 -1.442695, %v1397_v54 }
0x1382   :  { %2040 = vpow2.f32 %v1652_v30 }
0x1383   :  { %2042 = vpow2.f32 %v1654_v61 }
0x1386   :  { %v2037_v58 = vpop.eup %2036 }
0x1387   :  { %1342 = vrot.lane.b32.xlu0 %v2037_v58, %s2095_s1 }
0x138b   :  { %v2039_v60 = vpop.eup %2038 }
0x138c   :  { %1407 = vrot.lane.b32.xlu1 %v2039_v60, %s2095_s1  ;;  %v2041_v18 = vpop.eup %2040 }
0x138d   :  { %v1336_v62 = vadd.f32 1.0, %v2041_v18  ;;  %v2043_v63 = vpop.eup %2042 }
0x138e   :  { %v1401_v0 = vadd.f32 1.0, %v2043_v63 }
0x138f   :  { %2044 = vrcp.f32 %v1336_v62 }
0x1390   :  { %2046 = vrcp.f32 %v1401_v0 }
0x1399   :  { %v2045_v1 = vpop.eup %2044 }
0x139a   :  { %v2047_v5 = vpop.eup %2046  ;;  %v1340_v7 = vmul.f32 %v2045_v1, %v2421_v23 }
0x139b   :  { %v1405_v10 = vmul.f32 %v2047_v5, %v2423_v25 }
0x13f9   :  { %v1343_v3 = vpop.permute.xlu0 %1342 }
0x13fa   :  { %v1345_v2 = vmul.f32 %v2045_v1, %v1343_v3 }
0x13fc   :  { %1347 = vrot.lane.b32.xlu0 %v1345_v2, %s2095_s1 }
0x13fe   :  { %v1408_v4 = vpop.permute.xlu1 %1407 }
0x13ff   :  { %v1410_v6 = vmul.f32 %v2047_v5, %v1408_v4 }
0x1401   :  { %1412 = vrot.lane.b32.xlu1 %v1410_v6, %s2095_s1 }
0x146e   :  { %v1348_v8 = vpop.permute.xlu0 %1347 }
0x146f   :  { %v1350_v9 = vadd.f32 %v1348_v8, %v1340_v7 }
0x1471   :  { %2048 = vtanh.f32 %v1350_v9 }
0x1473   :  { %v1413_v11 = vpop.permute.xlu1 %1412 }
0x1474   :  { %v1415_v12 = vadd.f32 %v1413_v11, %v1405_v10 }
0x1476   :  { %2050 = vtanh.f32 %v1415_v12 }
0x147b   :  { %v2049_v13 = vpop.eup %2048 }
0x147c   :  { %1353 = vrot.lane.b32.xlu0 %v2049_v13, %s2095_s1 }
0x1480   :  { %v2051_v14 = vpop.eup %2050 }
0x1481   :  { %1418 = vrot.lane.b32.xlu1 %v2051_v14, %s2095_s1 }
0x14ee   :  { %v1354_v20 = vpop.permute.xlu0 %1353 }
0x14ef   :  { %v1356_v21 = vmul.f32 %v2045_v1, %v1354_v20 }
0x14f1   :  { %v1423_v22 = vpack.c.bf16 %v1356_v21, %v1356_v21 }
0x14f3   :  { %1425 = vrot.lane.b32.xlu0 %v1423_v22, %s2092_s22  ;;  %v1419_v23 = vpop.permute.xlu1 %1418 }
0x14f4   :  { %v1421_v24 = vmul.f32 %v2047_v5, %v1419_v23 }
0x14f6   :  { %v1422_v26 = vpack.c.bf16 %v1421_v24, %v1421_v24 }
0x14f8   :  { %1471 = vrot.lane.b32.xlu1 %v1422_v26, %s2092_s22 }
0x1565   :  { %v1426_v25 = vpop.permute.xlu0 %1425 }
0x1566   :  { %1896 = vmatmul.mubr.msk.bf16.vlgmr.msra.gmra.mrb[40].mxu0 %vm159_vm1, %v1426_v25 }
0x1567   :  { %1911 = vmatprep.mubr.msk.bf16.mxu0 %vm2097_vm0, %v2096_v17  ;;  %1908 = vmatpush3.bf16.msra.mxu0 %v1930_v49 }
0x1568   :  { %1909 = vmatprep.subr.bf16.mxu0 %v2096_v17 }
0x156a   :  { %v1472_v27 = vpop.permute.xlu1 %1471 }
0x156b   :  { %1904 = vmatmul.mubr.msk.bf16.vlgmr.msra.gmra.mrb[40].mxu1 %vm159_vm1, %v1472_v27  ;;  %1910 = vmatpush3.bf16.msra.mxu0 %v1931_v16 }
0x1639   :  { %v1464_v28 = vpop.f32.mrb[40].mxu0 }
0x163a   :  { %v1897_v29 = vpop.f32.mrb[41].mxu0 }
0x163b   :  { %v1467_v31 = vpop.f32.mrb[42].mxu0 }
0x163c   :  { %v1898_v32 = vpop.f32.mrb[43].mxu0 }
0x163e   :  { %v1510_v33 = vpop.f32.mrb[40].mxu1 }
0x163f   :  { %v1511_v34 = vadd.f32 %v1510_v33, %v1464_v28  ;;  %v1905_v35 = vpop.f32.mrb[41].mxu1 }
0x1640   :  { %v1513_v36 = vpop.f32.mrb[42].mxu1 }
0x1641   :  { %v1516_v38 = vadd.f32 %v2066_v37, %v1511_v34  ;;  %v1906_v39 = vpop.f32.mrb[43].mxu1 }
0x1643   :  { %2052 = vtanh.f32 %v1516_v38  ;;  %v1657_v55 = vmul.f32 -1.442695, %v1516_v38 }
0x1645   :  { %2054 = vpow2.f32 %v1657_v55 }
0x164d   :  { %v2053_v41 = vpop.eup %2052 }
0x164e   :  { %1526 = vrot.lane.b32.xlu0 %v2053_v41, %s2095_s1 }
0x164f   :  { %v2055_v40 = vpop.eup %2054 }
0x1650   :  { %v1520_v43 = vadd.f32 1.0, %v2055_v40 }
0x1652   :  { %2056 = vrcp.f32 %v1520_v43 }
0x165c   :  { %v2057_v45 = vpop.eup %2056 }
0x165d   :  { %v1524_v44 = vmul.f32 %v2057_v45, %v1350_v9 }
0x16c0   :  { %v1527_v46 = vpop.permute.xlu0 %1526 }
0x16c1   :  { %v1529_v42 = vmul.f32 %v2057_v45, %v1527_v46 }
0x16c3   :  { %1531 = vrot.lane.b32.xlu1 %v1529_v42, %s2095_s1 }
0x1735   :  { %v1532_v59 = vpop.permute.xlu1 %1531 }
0x1736   :  { %v1534_v48 = vadd.f32 %v1532_v59, %v1524_v44 }
0x1738   :  { %2058 = vtanh.f32 %v1534_v48 }
0x1742   :  { %v2059_v19 = vpop.eup %2058 }
0x1743   :  { %1537 = vrot.lane.b32.xlu0 %v2059_v19, %s2095_s1 }
0x17b5   :  { %v1538_v47 = vpop.permute.xlu0 %1537 }
0x17b6   :  { %v1540_v51 = vmul.f32 %v2057_v45, %v1538_v47 }
0x17b8   :  { %v1541_v52 = vpack.c.bf16 %v1540_v51, %v1540_v51 }
0x17ba   :  { %1547 = vrot.lane.b32.xlu1 %v1541_v52, %s2092_s22 }
0x182c   :  { %v1548_v15 = vpop.permute.xlu1 %1547 }
0x182d   :  { %1912 = vmatmul.mubr.msk.bf16.vlgmr.msra.gmra.mrb[44].mxu0 %vm159_vm1, %v1548_v15 }
0x1900   :  { %v1598_v54 = vpop.f32.mrb[44].mxu0 }
0x1901   :  { %v1599_v50 = vadd.f32 %v1658_v53, %v1598_v54  ;;  %v1913_v17 = vpop.f32.mrb[45].mxu0 }
0x1902   :  { %v1601_v56 = vpop.f32.mrb[46].mxu0 }
0x1903   :  { %1605 = vst.msk [vmem:[%s2489_s3] sm:$0xf] %vm1604_vm2, %v1599_v50  ;;  %v1914_v57 = vpop.f32.mrb[47].mxu0 }
0x1904   :  { %1610 = vsyncpa [#allocation3], 1 }

</bundles_post_ra>
